<compile_context>
chip_gen: v7x
topology: tpu7x:2x2x1
jax: 0.10.0
libtpu: 0.0.40
codegen_flags: <defaults>
</compile_context>

<pallas_src>
import functools

import jax
import jax.numpy as jnp
from jax import lax
from jax.experimental import pallas as pl
from jax.experimental.pallas import tpu as pltpu

D = 32           # config.dim
NUM_ITEMS = 20   # numItems
PAD_IDX = 0      # config.padIdx


def _round_up(a, m):
    return ((a + m - 1) // m) * m


def _vmem_spec():
    # Full-array blocks resident in VMEM (all shapes here are tiny).
    return pl.BlockSpec(memory_space=pltpu.MemorySpace.VMEM)


# ----------------------------------------------------------------------------
# Fused kernel: gather -> basket-max -> GRU -> lenX reduce -> scores
# ----------------------------------------------------------------------------
def dream_fused_kernel(idsx_ref, idso_ref, lenx_ref, itemw_ref, outw_ref,
                       outb_ref, wih_ref, whh_ref, bih_ref, bhh_ref, out_ref):
    """
    idsx_ref : (T*B, K) i32   basket item ids, time-major rows (row = t*B + b)
    idso_ref : (B, Np)  i32   score ids (tar || neg, zero-padded to Np = 128k)
    lenx_ref : (B, T)   f32   per-timestep weights (lenX)
    itemw_ref: (Vp, D)  bf16  item embedding table (vocab zero-padded)
    outw_ref : (Vp, D)  bf16  output embedding table
    outb_ref : (1, Vp)  f32   output bias row
    wih_ref  : (D, Gp)  bf16  [W_ir | W_iz | W_in], lane-padded to Gp >= 3D
    whh_ref  : (D, Gp)  bf16  [W_hr | W_hz | W_hn]
    bih_ref  : (1, Gp)  f32
    bhh_ref  : (1, Gp)  f32
    out_ref  : (B, Np)  f32   scores (lane-dense)
    """
    TB, K = idsx_ref.shape
    Vp, Dh = itemw_ref.shape
    B, Np = out_ref.shape
    T = TB // B

    # ---- in-kernel embedding gather via one-hot MXU matmul + basket max ----
    itemw = itemw_ref[...]
    idsx = idsx_ref[...]
    iota_v = lax.broadcasted_iota(jnp.int32, (TB, Vp), 1)
    x_all = None
    for k in range(K):                                      # K is small & static
        onehot = (idsx[:, k:k + 1] == iota_v).astype(jnp.bfloat16)     # (TB, Vp)
        emb_k = jnp.dot(onehot, itemw,
                        preferred_element_type=jnp.float32)            # (TB, D)
        x_all = emb_k if x_all is None else jnp.maximum(x_all, emb_k)

    # ---- input-side gate projections hoisted out of the recurrence ----
    xproj = jnp.dot(x_all.astype(jnp.bfloat16), wih_ref[...],
                    preferred_element_type=jnp.float32) + bih_ref[...]  # (TB, Gp)

    # ---- GRU recurrence (statically unrolled; one matmul per step) ----
    whh = whh_ref[...]          # loop-invariant loads hoisted out of the loop
    bhh = bhh_ref[...]
    lenx = lenx_ref[...]
    h = jnp.zeros((B, Dh), jnp.float32)
    acc = jnp.zeros((B, Dh), jnp.float32)
    for t in range(T):
        xp = xproj[t * B:(t + 1) * B, :]                                # (B, Gp)
        hp = jnp.dot(h.astype(jnp.bfloat16), whh,
                     preferred_element_type=jnp.float32) + bhh          # (B, Gp)
        r = jax.nn.sigmoid(xp[:, :Dh] + hp[:, :Dh])
        z = jax.nn.sigmoid(xp[:, Dh:2 * Dh] + hp[:, Dh:2 * Dh])
        n = jnp.tanh(xp[:, 2 * Dh:3 * Dh] + r * hp[:, 2 * Dh:3 * Dh])
        h = (1.0 - z) * n + z * h               # PyTorch GRU cell update
        acc = acc + lenx[:, t:t + 1] * h        # lenX-weighted accumulation

    # ---- scores: hAct . outEmb[v] + outB[v] for all v, then column-select ----
    hWb = lax.dot_general(acc.astype(jnp.bfloat16), outw_ref[...],
                          (((1,), (1,)), ((), ())),
                          preferred_element_type=jnp.float32) + outb_ref[...]  # (B, Vp)
    idso = idso_ref[...]                                                        # (B, Np)
    sel = (idso[:, None, :] ==
           lax.broadcasted_iota(jnp.int32, (B, Vp, Np), 1)).astype(jnp.bfloat16)  # (B,Vp,Np)
    scores = lax.dot_general(hWb[:, None, :].astype(jnp.bfloat16), sel,
                             (((2,), (1,)), ((0,), (0,))),
                             preferred_element_type=jnp.float32)                # (B,1,Np)
    out_ref[...] = scores[:, 0, :]


# ----------------------------------------------------------------------------
# Forward pass (tiny host-side packing glue only — no big-tensor HBM traffic)
# ----------------------------------------------------------------------------
@functools.partial(jax.jit, static_argnames=("is_eval",))
def dream_forward(params, x, lenX, tar, neg, is_eval):
    itemW, outW, outB = params["itemEmb"], params["outEmb"], params["outB"]
    w_ih, w_hh = params["w_ih"], params["w_hh"]
    b_ih, b_hh = params["b_ih"], params["b_hh"]

    B, T, K = x.shape
    V, Dh = itemW.shape
    Vp = _round_up(V, 8)
    Gp = _round_up(3 * Dh, 128)               # lane-dense gate width

    # Pack tables / weights (all tiny).
    itemw_p = jnp.zeros((Vp, Dh), jnp.bfloat16).at[:V].set(itemW.astype(jnp.bfloat16))
    outw_p = jnp.zeros((Vp, Dh), jnp.bfloat16).at[:V].set(outW.astype(jnp.bfloat16))
    outb_row = jnp.zeros((1, Vp), jnp.float32).at[0, :V].set(outB[:, 0])
    wih_cat = jnp.zeros((Dh, Gp), jnp.bfloat16).at[:, :3 * Dh].set(
        jnp.concatenate([w_ih[0], w_ih[1], w_ih[2]], axis=1).astype(jnp.bfloat16))
    whh_cat = jnp.zeros((Dh, Gp), jnp.bfloat16).at[:, :3 * Dh].set(
        jnp.concatenate([w_hh[0], w_hh[1], w_hh[2]], axis=1).astype(jnp.bfloat16))
    bih_cat = jnp.zeros((1, Gp), jnp.float32).at[:, :3 * Dh].set(
        jnp.concatenate([b_ih[0], b_ih[1], b_ih[2]], axis=1))
    bhh_cat = jnp.zeros((1, Gp), jnp.float32).at[:, :3 * Dh].set(
        jnp.concatenate([b_hh[0], b_hh[1], b_hh[2]], axis=1))

    # Basket ids, time-major rows (row = t*B + b); ids only — the (T,B,K,D)
    # embedding tensor is never materialized in HBM.
    idsx = jnp.transpose(x, (1, 0, 2)).reshape(T * B, K).astype(jnp.int32)

    # TODO(synk): F.dropout(p=0.5) in training mode is stochastic and cannot be
    # reproduced bit-wise vs torch RNG; omitted (== dropout in eval mode).

    if is_eval:
        n_tar = tar.shape[0]
        ids_all = jnp.broadcast_to(tar.astype(jnp.int32)[None, :], (B, n_tar))
        n_out = n_tar
    else:
        n_tar, n_neg = tar.shape[1], neg.shape[1]
        ids_all = jnp.concatenate([tar, neg], axis=1).astype(jnp.int32)
        n_out = n_tar + n_neg

    Np = _round_up(n_out, 128)                 # lane-dense score output
    ids_pad = jnp.zeros((B, Np), jnp.int32).at[:, :n_out].set(ids_all)  # pad = padIdx

    scores = pl.pallas_call(
        dream_fused_kernel,
        out_shape=jax.ShapeDtypeStruct((B, Np), jnp.float32),
        in_specs=[_vmem_spec()] * 10,
        out_specs=_vmem_spec(),
        # TODO(synk): for production-sized B/T/catalog, add a grid over T / N
        # with BlockSpecs + dimension_semantics=("parallel","arbitrary") so the
        # inputs are pipelined instead of fully VMEM-resident (v7x: 64 MiB VMEM).
    )(idsx, ids_pad, lenX.astype(jnp.float32), itemw_p, outw_p, outb_row,
      wih_cat, whh_cat, bih_cat, bhh_cat)

    if is_eval:
        return scores[:, :n_tar], 0
    return scores[:, :n_tar], scores[:, n_tar:n_tar + n_neg]


# ----------------------------------------------------------------------------
# Pure-JAX reference (for correctness check)
# ----------------------------------------------------------------------------
def dream_forward_ref(params, x, lenX, tar, neg, is_eval):
    itemW, outW, outB = params["itemEmb"], params["outEmb"], params["outB"]
    w_ih, w_hh, b_ih, b_hh = (params["w_ih"], params["w_hh"],
                              params["b_ih"], params["b_hh"])
    embs = itemW[x]                                       # (B, T, K, D)
    seq = jnp.max(embs, axis=2)                           # (B, T, D)
    xs = jnp.transpose(seq, (1, 0, 2))                    # (T, B, D)
    B = x.shape[0]

    def step(h, x_t):
        i_r = x_t @ w_ih[0] + b_ih[0]
        i_z = x_t @ w_ih[1] + b_ih[1]
        i_n = x_t @ w_ih[2] + b_ih[2]
        h_r = h @ w_hh[0] + b_hh[0]
        h_z = h @ w_hh[1] + b_hh[1]
        h_n = h @ w_hh[2] + b_hh[2]
        r = jax.nn.sigmoid(i_r + h_r)
        z = jax.nn.sigmoid(i_z + h_z)
        n = jnp.tanh(i_n + r * h_n)
        h_new = (1.0 - z) * n + z * h
        return h_new, h_new

    h0 = jnp.zeros((B, D), jnp.float32)
    _, hs = lax.scan(step, h0, xs)                        # (T, B, D)
    h = jnp.transpose(hs, (1, 0, 2))                      # (B, T, D)
    hact = jnp.einsum("bt,btd->bd", lenX, h)              # (B, D)

    if is_eval:
        tarE = outW[tar]
        tarB = outB[tar][:, 0]
        return hact @ tarE.T + tarB[None, :], 0
    tarE, tarB = outW[tar], outB[tar][..., 0]
    st = jnp.einsum("bd,bnd->bn", hact, tarE) + tarB
    negE, negB = outW[neg], outB[neg][..., 0]
    sn = jnp.einsum("bd,bnd->bn", hact, negE) + negB
    return st, sn


if __name__ == "__main__":
    key = jax.random.PRNGKey(0)
    ks = jax.random.split(key, 12)

    B, T, K = 2, 8, 4         # batch, #baskets per user, items per basket
    N_TAR, N_NEG = 5, 6

    # --- deterministic parameter init (shapes match nn.Module __init__) ---
    itemW = 0.1 * jax.random.normal(ks[0], (NUM_ITEMS + 1, D), jnp.float32)
    itemW = itemW.at[PAD_IDX].set(0.0)                   # padding_idx row
    itemW = itemW.at[NUM_ITEMS].set(-100.0)              # itemEmb.weight[numItems] = -100
    outW = 0.1 * jax.random.normal(ks[1], (NUM_ITEMS + 1, D), jnp.float32)
    outW = outW.at[PAD_IDX].set(0.0)
    outB = 0.1 * jax.random.normal(ks[2], (NUM_ITEMS + 1, 1), jnp.float32)
    outB = outB.at[PAD_IDX].set(0.0)
    scale = 1.0 / jnp.sqrt(jnp.float32(D))
    params = dict(
        itemEmb=itemW, outEmb=outW, outB=outB,
        w_ih=scale * jax.random.normal(ks[3], (3, D, D), jnp.float32),
        w_hh=scale * jax.random.normal(ks[4], (3, D, D), jnp.float32),
        b_ih=scale * jax.random.normal(ks[5], (3, 1, D), jnp.float32),
        b_hh=scale * jax.random.normal(ks[6], (3, 1, D), jnp.float32),
    )
    # (self.testOut Linear is unused in forward — not instantiated.)

    # --- inputs ---
    x = jax.random.randint(ks[7], (B, T, K), 1, NUM_ITEMS)      # item ids
    lens = jnp.array([5, 8], jnp.int32)
    lenX = jax.nn.one_hot(lens - 1, T, dtype=jnp.float32)        # (B, T)
    tar = jax.random.randint(ks[8], (B, N_TAR), 1, NUM_ITEMS)
    neg = jax.random.randint(ks[9], (B, N_NEG), 1, NUM_ITEMS)
    tar_eval = jnp.arange(NUM_ITEMS, dtype=jnp.int32)            # eval: 1-D targets

    # --- run fused Pallas kernel (training + eval paths) ---
    st, sn = dream_forward(params, x, lenX, tar, neg, is_eval=False)
    st = jax.block_until_ready(st)
    sn = jax.block_until_ready(sn)
    se, zero = dream_forward(params, x, lenX, tar_eval, None, is_eval=True)
    se = jax.block_until_ready(se)

    # --- check against pure-JAX f32 reference (kernel uses bf16 matmul ops) ---
    st_r, sn_r = dream_forward_ref(params, x, lenX, tar, neg, False)
    se_r, _ = dream_forward_ref(params, x, lenX, tar_eval, None, True)
    assert st.shape == (B, N_TAR) and sn.shape == (B, N_NEG)
    assert se.shape == (B, NUM_ITEMS) and zero == 0
    ok = (jnp.allclose(st, st_r, atol=2e-2, rtol=2e-2)
          and jnp.allclose(sn, sn_r, atol=2e-2, rtol=2e-2)
          and jnp.allclose(se, se_r, atol=2e-2, rtol=2e-2))
    if not bool(ok):
        raise SystemExit("mismatch vs reference")
    print("KERNEL_OK")
</pallas_src>

<mosaic_0001>
module attributes {stable_mosaic.version = 11 : i64} {
  func.func @dream_fused_kernel(%arg0: memref<16x4xi32, #tpu.memory_space<vmem>>, %arg1: memref<2x128xi32, #tpu.memory_space<vmem>>, %arg2: memref<2x8xf32, #tpu.memory_space<vmem>>, %arg3: memref<24x32xbf16, #tpu.memory_space<vmem>>, %arg4: memref<24x32xbf16, #tpu.memory_space<vmem>>, %arg5: memref<1x24xf32, #tpu.memory_space<vmem>>, %arg6: memref<32x128xbf16, #tpu.memory_space<vmem>>, %arg7: memref<32x128xbf16, #tpu.memory_space<vmem>>, %arg8: memref<1x128xf32, #tpu.memory_space<vmem>>, %arg9: memref<1x128xf32, #tpu.memory_space<vmem>>, %arg10: memref<2x128xf32, #tpu.memory_space<vmem>>) attributes {dimension_semantics = [], scalar_prefetch = 0 : i64, scratch_operands = 0 : i64, tpu.core_type = #tpu.core_type<tc>} {
    %c0 = arith.constant 0 : index
    %c0_0 = arith.constant 0 : index
    %0 = vector.load %arg3[%c0, %c0_0] : memref<24x32xbf16, #tpu.memory_space<vmem>>, vector<24x32xbf16>
    %c0_1 = arith.constant 0 : index
    %c0_2 = arith.constant 0 : index
    %1 = vector.load %arg0[%c0_1, %c0_2] : memref<16x4xi32, #tpu.memory_space<vmem>>, vector<16x4xi32>
    %2 = tpu.iota {dimensions = array<i32: 1>} : vector<16x24xi32>
    %3 = vector.extract_strided_slice %1 {offsets = [0, 0], sizes = [16, 1], strides = [1, 1]} : vector<16x4xi32> to vector<16x1xi32>
    %4 = vector.broadcast %3 : vector<16x1xi32> to vector<16x24xi32>
    %5 = arith.cmpi eq, %4, %2 : vector<16x24xi32>
    %6 = arith.extui %5 : vector<16x24xi1> to vector<16x24xi32>
    %7 = arith.sitofp %6 : vector<16x24xi32> to vector<16x24xf32>
    %8 = arith.truncf %7 : vector<16x24xf32> to vector<16x24xbf16>
    %cst = arith.constant dense<0.000000e+00> : vector<16x32xf32>
    %9 = tpu.matmul %8, %0, %cst {dimension_numbers = #tpu.dot_dimension_numbers<[1], [0], [0], [1], [0, 0, 1, 1], [], []>} : vector<16x24xbf16>, vector<24x32xbf16>, vector<16x32xf32> -> vector<16x32xf32>
    %10 = vector.extract_strided_slice %1 {offsets = [0, 1], sizes = [16, 1], strides = [1, 1]} : vector<16x4xi32> to vector<16x1xi32>
    %11 = vector.broadcast %10 : vector<16x1xi32> to vector<16x24xi32>
    %12 = arith.cmpi eq, %11, %2 : vector<16x24xi32>
    %13 = arith.extui %12 : vector<16x24xi1> to vector<16x24xi32>
    %14 = arith.sitofp %13 : vector<16x24xi32> to vector<16x24xf32>
    %15 = arith.truncf %14 : vector<16x24xf32> to vector<16x24xbf16>
    %cst_3 = arith.constant dense<0.000000e+00> : vector<16x32xf32>
    %16 = tpu.matmul %15, %0, %cst_3 {dimension_numbers = #tpu.dot_dimension_numbers<[1], [0], [0], [1], [0, 0, 1, 1], [], []>} : vector<16x24xbf16>, vector<24x32xbf16>, vector<16x32xf32> -> vector<16x32xf32>
    %17 = arith.maximumf %9, %16 : vector<16x32xf32>
    %18 = vector.extract_strided_slice %1 {offsets = [0, 2], sizes = [16, 1], strides = [1, 1]} : vector<16x4xi32> to vector<16x1xi32>
    %19 = vector.broadcast %18 : vector<16x1xi32> to vector<16x24xi32>
    %20 = arith.cmpi eq, %19, %2 : vector<16x24xi32>
    %21 = arith.extui %20 : vector<16x24xi1> to vector<16x24xi32>
    %22 = arith.sitofp %21 : vector<16x24xi32> to vector<16x24xf32>
    %23 = arith.truncf %22 : vector<16x24xf32> to vector<16x24xbf16>
    %cst_4 = arith.constant dense<0.000000e+00> : vector<16x32xf32>
    %24 = tpu.matmul %23, %0, %cst_4 {dimension_numbers = #tpu.dot_dimension_numbers<[1], [0], [0], [1], [0, 0, 1, 1], [], []>} : vector<16x24xbf16>, vector<24x32xbf16>, vector<16x32xf32> -> vector<16x32xf32>
    %25 = arith.maximumf %17, %24 : vector<16x32xf32>
    %26 = vector.extract_strided_slice %1 {offsets = [0, 3], sizes = [16, 1], strides = [1, 1]} : vector<16x4xi32> to vector<16x1xi32>
    %27 = vector.broadcast %26 : vector<16x1xi32> to vector<16x24xi32>
    %28 = arith.cmpi eq, %27, %2 : vector<16x24xi32>
    %29 = arith.extui %28 : vector<16x24xi1> to vector<16x24xi32>
    %30 = arith.sitofp %29 : vector<16x24xi32> to vector<16x24xf32>
    %31 = arith.truncf %30 : vector<16x24xf32> to vector<16x24xbf16>
    %cst_5 = arith.constant dense<0.000000e+00> : vector<16x32xf32>
    %32 = tpu.matmul %31, %0, %cst_5 {dimension_numbers = #tpu.dot_dimension_numbers<[1], [0], [0], [1], [0, 0, 1, 1], [], []>} : vector<16x24xbf16>, vector<24x32xbf16>, vector<16x32xf32> -> vector<16x32xf32>
    %33 = arith.maximumf %25, %32 : vector<16x32xf32>
    %34 = arith.truncf %33 : vector<16x32xf32> to vector<16x32xbf16>
    %c0_6 = arith.constant 0 : index
    %c0_7 = arith.constant 0 : index
    %35 = vector.load %arg6[%c0_6, %c0_7] : memref<32x128xbf16, #tpu.memory_space<vmem>>, vector<32x128xbf16>
    %cst_8 = arith.constant dense<0.000000e+00> : vector<16x128xf32>
    %36 = tpu.matmul %34, %35, %cst_8 {dimension_numbers = #tpu.dot_dimension_numbers<[1], [0], [0], [1], [0, 0, 1, 1], [], []>} : vector<16x32xbf16>, vector<32x128xbf16>, vector<16x128xf32> -> vector<16x128xf32>
    %c0_9 = arith.constant 0 : index
    %c0_10 = arith.constant 0 : index
    %37 = vector.load %arg8[%c0_9, %c0_10] : memref<1x128xf32, #tpu.memory_space<vmem>>, vector<1x128xf32>
    %38 = vector.broadcast %37 : vector<1x128xf32> to vector<16x128xf32>
    %39 = arith.addf %36, %38 : vector<16x128xf32>
    %c0_11 = arith.constant 0 : index
    %c0_12 = arith.constant 0 : index
    %40 = vector.load %arg7[%c0_11, %c0_12] : memref<32x128xbf16, #tpu.memory_space<vmem>>, vector<32x128xbf16>
    %c0_13 = arith.constant 0 : index
    %c0_14 = arith.constant 0 : index
    %41 = vector.load %arg9[%c0_13, %c0_14] : memref<1x128xf32, #tpu.memory_space<vmem>>, vector<1x128xf32>
    %c0_15 = arith.constant 0 : index
    %c0_16 = arith.constant 0 : index
    %42 = vector.load %arg2[%c0_15, %c0_16] : memref<2x8xf32, #tpu.memory_space<vmem>>, vector<2x8xf32>
    %cst_17 = arith.constant 0.000000e+00 : f32
    %43 = vector.broadcast %cst_17 : f32 to vector<2x32xf32>
    %cst_18 = arith.constant 0.000000e+00 : f32
    %44 = vector.broadcast %cst_18 : f32 to vector<2x32xf32>
    %45 = vector.extract_strided_slice %39 {offsets = [0, 0], sizes = [2, 128], strides = [1, 1]} : vector<16x128xf32> to vector<2x128xf32>
    %46 = arith.truncf %43 : vector<2x32xf32> to vector<2x32xbf16>
    %cst_19 = arith.constant dense<0.000000e+00> : vector<2x128xf32>
    %47 = tpu.matmul %46, %40, %cst_19 {dimension_numbers = #tpu.dot_dimension_numbers<[1], [0], [0], [1], [0, 0, 1, 1], [], []>} : vector<2x32xbf16>, vector<32x128xbf16>, vector<2x128xf32> -> vector<2x128xf32>
    %48 = vector.broadcast %41 : vector<1x128xf32> to vector<2x128xf32>
    %49 = arith.addf %47, %48 : vector<2x128xf32>
    %50 = vector.extract_strided_slice %45 {offsets = [0, 0], sizes = [2, 32], strides = [1, 1]} : vector<2x128xf32> to vector<2x32xf32>
    %51 = vector.extract_strided_slice %49 {offsets = [0, 0], sizes = [2, 32], strides = [1, 1]} : vector<2x128xf32> to vector<2x32xf32>
    %52 = arith.addf %50, %51 : vector<2x32xf32>
    %53 = arith.negf %52 : vector<2x32xf32>
    %54 = math.exp %53 : vector<2x32xf32>
    %cst_20 = arith.constant 1.000000e+00 : f32
    %55 = vector.broadcast %cst_20 : f32 to vector<2x32xf32>
    %56 = arith.addf %55, %54 : vector<2x32xf32>
    %57 = arith.divf %55, %56 : vector<2x32xf32>
    %58 = vector.extract_strided_slice %45 {offsets = [0, 32], sizes = [2, 32], strides = [1, 1]} : vector<2x128xf32> to vector<2x32xf32>
    %59 = vector.extract_strided_slice %49 {offsets = [0, 32], sizes = [2, 32], strides = [1, 1]} : vector<2x128xf32> to vector<2x32xf32>
    %60 = arith.addf %58, %59 : vector<2x32xf32>
    %61 = arith.negf %60 : vector<2x32xf32>
    %62 = math.exp %61 : vector<2x32xf32>
    %cst_21 = arith.constant 1.000000e+00 : f32
    %63 = vector.broadcast %cst_21 : f32 to vector<2x32xf32>
    %64 = arith.addf %63, %62 : vector<2x32xf32>
    %65 = arith.divf %63, %64 : vector<2x32xf32>
    %66 = vector.extract_strided_slice %45 {offsets = [0, 64], sizes = [2, 32], strides = [1, 1]} : vector<2x128xf32> to vector<2x32xf32>
    %67 = vector.extract_strided_slice %49 {offsets = [0, 64], sizes = [2, 32], strides = [1, 1]} : vector<2x128xf32> to vector<2x32xf32>
    %68 = arith.mulf %57, %67 : vector<2x32xf32>
    %69 = arith.addf %66, %68 : vector<2x32xf32>
    %70 = math.tanh %69 : vector<2x32xf32>
    %cst_22 = arith.constant 1.000000e+00 : f32
    %71 = vector.broadcast %cst_22 : f32 to vector<2x32xf32>
    %72 = arith.subf %71, %65 : vector<2x32xf32>
    %73 = arith.mulf %72, %70 : vector<2x32xf32>
    %74 = arith.mulf %65, %43 : vector<2x32xf32>
    %75 = arith.addf %73, %74 : vector<2x32xf32>
    %76 = vector.extract_strided_slice %42 {offsets = [0, 0], sizes = [2, 1], strides = [1, 1]} : vector<2x8xf32> to vector<2x1xf32>
    %77 = vector.broadcast %76 : vector<2x1xf32> to vector<2x32xf32>
    %78 = arith.mulf %77, %75 : vector<2x32xf32>
    %79 = arith.addf %44, %78 : vector<2x32xf32>
    %80 = vector.extract_strided_slice %39 {offsets = [2, 0], sizes = [2, 128], strides = [1, 1]} : vector<16x128xf32> to vector<2x128xf32>
    %81 = arith.truncf %75 : vector<2x32xf32> to vector<2x32xbf16>
    %cst_23 = arith.constant dense<0.000000e+00> : vector<2x128xf32>
    %82 = tpu.matmul %81, %40, %cst_23 {dimension_numbers = #tpu.dot_dimension_numbers<[1], [0], [0], [1], [0, 0, 1, 1], [], []>} : vector<2x32xbf16>, vector<32x128xbf16>, vector<2x128xf32> -> vector<2x128xf32>
    %83 = vector.broadcast %41 : vector<1x128xf32> to vector<2x128xf32>
    %84 = arith.addf %82, %83 : vector<2x128xf32>
    %85 = vector.extract_strided_slice %80 {offsets = [0, 0], sizes = [2, 32], strides = [1, 1]} : vector<2x128xf32> to vector<2x32xf32>
    %86 = vector.extract_strided_slice %84 {offsets = [0, 0], sizes = [2, 32], strides = [1, 1]} : vector<2x128xf32> to vector<2x32xf32>
    %87 = arith.addf %85, %86 : vector<2x32xf32>
    %88 = arith.negf %87 : vector<2x32xf32>
    %89 = math.exp %88 : vector<2x32xf32>
    %cst_24 = arith.constant 1.000000e+00 : f32
    %90 = vector.broadcast %cst_24 : f32 to vector<2x32xf32>
    %91 = arith.addf %90, %89 : vector<2x32xf32>
    %92 = arith.divf %90, %91 : vector<2x32xf32>
    %93 = vector.extract_strided_slice %80 {offsets = [0, 32], sizes = [2, 32], strides = [1, 1]} : vector<2x128xf32> to vector<2x32xf32>
    %94 = vector.extract_strided_slice %84 {offsets = [0, 32], sizes = [2, 32], strides = [1, 1]} : vector<2x128xf32> to vector<2x32xf32>
    %95 = arith.addf %93, %94 : vector<2x32xf32>
    %96 = arith.negf %95 : vector<2x32xf32>
    %97 = math.exp %96 : vector<2x32xf32>
    %cst_25 = arith.constant 1.000000e+00 : f32
    %98 = vector.broadcast %cst_25 : f32 to vector<2x32xf32>
    %99 = arith.addf %98, %97 : vector<2x32xf32>
    %100 = arith.divf %98, %99 : vector<2x32xf32>
    %101 = vector.extract_strided_slice %80 {offsets = [0, 64], sizes = [2, 32], strides = [1, 1]} : vector<2x128xf32> to vector<2x32xf32>
    %102 = vector.extract_strided_slice %84 {offsets = [0, 64], sizes = [2, 32], strides = [1, 1]} : vector<2x128xf32> to vector<2x32xf32>
    %103 = arith.mulf %92, %102 : vector<2x32xf32>
    %104 = arith.addf %101, %103 : vector<2x32xf32>
    %105 = math.tanh %104 : vector<2x32xf32>
    %cst_26 = arith.constant 1.000000e+00 : f32
    %106 = vector.broadcast %cst_26 : f32 to vector<2x32xf32>
    %107 = arith.subf %106, %100 : vector<2x32xf32>
    %108 = arith.mulf %107, %105 : vector<2x32xf32>
    %109 = arith.mulf %100, %75 : vector<2x32xf32>
    %110 = arith.addf %108, %109 : vector<2x32xf32>
    %111 = vector.extract_strided_slice %42 {offsets = [0, 1], sizes = [2, 1], strides = [1, 1]} : vector<2x8xf32> to vector<2x1xf32>
    %112 = vector.broadcast %111 : vector<2x1xf32> to vector<2x32xf32>
    %113 = arith.mulf %112, %110 : vector<2x32xf32>
    %114 = arith.addf %79, %113 : vector<2x32xf32>
    %115 = vector.extract_strided_slice %39 {offsets = [4, 0], sizes = [2, 128], strides = [1, 1]} : vector<16x128xf32> to vector<2x128xf32>
    %116 = arith.truncf %110 : vector<2x32xf32> to vector<2x32xbf16>
    %cst_27 = arith.constant dense<0.000000e+00> : vector<2x128xf32>
    %117 = tpu.matmul %116, %40, %cst_27 {dimension_numbers = #tpu.dot_dimension_numbers<[1], [0], [0], [1], [0, 0, 1, 1], [], []>} : vector<2x32xbf16>, vector<32x128xbf16>, vector<2x128xf32> -> vector<2x128xf32>
    %118 = vector.broadcast %41 : vector<1x128xf32> to vector<2x128xf32>
    %119 = arith.addf %117, %118 : vector<2x128xf32>
    %120 = vector.extract_strided_slice %115 {offsets = [0, 0], sizes = [2, 32], strides = [1, 1]} : vector<2x128xf32> to vector<2x32xf32>
    %121 = vector.extract_strided_slice %119 {offsets = [0, 0], sizes = [2, 32], strides = [1, 1]} : vector<2x128xf32> to vector<2x32xf32>
    %122 = arith.addf %120, %121 : vector<2x32xf32>
    %123 = arith.negf %122 : vector<2x32xf32>
    %124 = math.exp %123 : vector<2x32xf32>
    %cst_28 = arith.constant 1.000000e+00 : f32
    %125 = vector.broadcast %cst_28 : f32 to vector<2x32xf32>
    %126 = arith.addf %125, %124 : vector<2x32xf32>
    %127 = arith.divf %125, %126 : vector<2x32xf32>
    %128 = vector.extract_strided_slice %115 {offsets = [0, 32], sizes = [2, 32], strides = [1, 1]} : vector<2x128xf32> to vector<2x32xf32>
    %129 = vector.extract_strided_slice %119 {offsets = [0, 32], sizes = [2, 32], strides = [1, 1]} : vector<2x128xf32> to vector<2x32xf32>
    %130 = arith.addf %128, %129 : vector<2x32xf32>
    %131 = arith.negf %130 : vector<2x32xf32>
    %132 = math.exp %131 : vector<2x32xf32>
    %cst_29 = arith.constant 1.000000e+00 : f32
    %133 = vector.broadcast %cst_29 : f32 to vector<2x32xf32>
    %134 = arith.addf %133, %132 : vector<2x32xf32>
    %135 = arith.divf %133, %134 : vector<2x32xf32>
    %136 = vector.extract_strided_slice %115 {offsets = [0, 64], sizes = [2, 32], strides = [1, 1]} : vector<2x128xf32> to vector<2x32xf32>
    %137 = vector.extract_strided_slice %119 {offsets = [0, 64], sizes = [2, 32], strides = [1, 1]} : vector<2x128xf32> to vector<2x32xf32>
    %138 = arith.mulf %127, %137 : vector<2x32xf32>
    %139 = arith.addf %136, %138 : vector<2x32xf32>
    %140 = math.tanh %139 : vector<2x32xf32>
    %cst_30 = arith.constant 1.000000e+00 : f32
    %141 = vector.broadcast %cst_30 : f32 to vector<2x32xf32>
    %142 = arith.subf %141, %135 : vector<2x32xf32>
    %143 = arith.mulf %142, %140 : vector<2x32xf32>
    %144 = arith.mulf %135, %110 : vector<2x32xf32>
    %145 = arith.addf %143, %144 : vector<2x32xf32>
    %146 = vector.extract_strided_slice %42 {offsets = [0, 2], sizes = [2, 1], strides = [1, 1]} : vector<2x8xf32> to vector<2x1xf32>
    %147 = vector.broadcast %146 : vector<2x1xf32> to vector<2x32xf32>
    %148 = arith.mulf %147, %145 : vector<2x32xf32>
    %149 = arith.addf %114, %148 : vector<2x32xf32>
    %150 = vector.extract_strided_slice %39 {offsets = [6, 0], sizes = [2, 128], strides = [1, 1]} : vector<16x128xf32> to vector<2x128xf32>
    %151 = arith.truncf %145 : vector<2x32xf32> to vector<2x32xbf16>
    %cst_31 = arith.constant dense<0.000000e+00> : vector<2x128xf32>
    %152 = tpu.matmul %151, %40, %cst_31 {dimension_numbers = #tpu.dot_dimension_numbers<[1], [0], [0], [1], [0, 0, 1, 1], [], []>} : vector<2x32xbf16>, vector<32x128xbf16>, vector<2x128xf32> -> vector<2x128xf32>
    %153 = vector.broadcast %41 : vector<1x128xf32> to vector<2x128xf32>
    %154 = arith.addf %152, %153 : vector<2x128xf32>
    %155 = vector.extract_strided_slice %150 {offsets = [0, 0], sizes = [2, 32], strides = [1, 1]} : vector<2x128xf32> to vector<2x32xf32>
    %156 = vector.extract_strided_slice %154 {offsets = [0, 0], sizes = [2, 32], strides = [1, 1]} : vector<2x128xf32> to vector<2x32xf32>
    %157 = arith.addf %155, %156 : vector<2x32xf32>
    %158 = arith.negf %157 : vector<2x32xf32>
    %159 = math.exp %158 : vector<2x32xf32>
    %cst_32 = arith.constant 1.000000e+00 : f32
    %160 = vector.broadcast %cst_32 : f32 to vector<2x32xf32>
    %161 = arith.addf %160, %159 : vector<2x32xf32>
    %162 = arith.divf %160, %161 : vector<2x32xf32>
    %163 = vector.extract_strided_slice %150 {offsets = [0, 32], sizes = [2, 32], strides = [1, 1]} : vector<2x128xf32> to vector<2x32xf32>
    %164 = vector.extract_strided_slice %154 {offsets = [0, 32], sizes = [2, 32], strides = [1, 1]} : vector<2x128xf32> to vector<2x32xf32>
    %165 = arith.addf %163, %164 : vector<2x32xf32>
    %166 = arith.negf %165 : vector<2x32xf32>
    %167 = math.exp %166 : vector<2x32xf32>
    %cst_33 = arith.constant 1.000000e+00 : f32
    %168 = vector.broadcast %cst_33 : f32 to vector<2x32xf32>
    %169 = arith.addf %168, %167 : vector<2x32xf32>
    %170 = arith.divf %168, %169 : vector<2x32xf32>
    %171 = vector.extract_strided_slice %150 {offsets = [0, 64], sizes = [2, 32], strides = [1, 1]} : vector<2x128xf32> to vector<2x32xf32>
    %172 = vector.extract_strided_slice %154 {offsets = [0, 64], sizes = [2, 32], strides = [1, 1]} : vector<2x128xf32> to vector<2x32xf32>
    %173 = arith.mulf %162, %172 : vector<2x32xf32>
    %174 = arith.addf %171, %173 : vector<2x32xf32>
    %175 = math.tanh %174 : vector<2x32xf32>
    %cst_34 = arith.constant 1.000000e+00 : f32
    %176 = vector.broadcast %cst_34 : f32 to vector<2x32xf32>
    %177 = arith.subf %176, %170 : vector<2x32xf32>
    %178 = arith.mulf %177, %175 : vector<2x32xf32>
    %179 = arith.mulf %170, %145 : vector<2x32xf32>
    %180 = arith.addf %178, %179 : vector<2x32xf32>
    %181 = vector.extract_strided_slice %42 {offsets = [0, 3], sizes = [2, 1], strides = [1, 1]} : vector<2x8xf32> to vector<2x1xf32>
    %182 = vector.broadcast %181 : vector<2x1xf32> to vector<2x32xf32>
    %183 = arith.mulf %182, %180 : vector<2x32xf32>
    %184 = arith.addf %149, %183 : vector<2x32xf32>
    %185 = vector.extract_strided_slice %39 {offsets = [8, 0], sizes = [2, 128], strides = [1, 1]} : vector<16x128xf32> to vector<2x128xf32>
    %186 = arith.truncf %180 : vector<2x32xf32> to vector<2x32xbf16>
    %cst_35 = arith.constant dense<0.000000e+00> : vector<2x128xf32>
    %187 = tpu.matmul %186, %40, %cst_35 {dimension_numbers = #tpu.dot_dimension_numbers<[1], [0], [0], [1], [0, 0, 1, 1], [], []>} : vector<2x32xbf16>, vector<32x128xbf16>, vector<2x128xf32> -> vector<2x128xf32>
    %188 = vector.broadcast %41 : vector<1x128xf32> to vector<2x128xf32>
    %189 = arith.addf %187, %188 : vector<2x128xf32>
    %190 = vector.extract_strided_slice %185 {offsets = [0, 0], sizes = [2, 32], strides = [1, 1]} : vector<2x128xf32> to vector<2x32xf32>
    %191 = vector.extract_strided_slice %189 {offsets = [0, 0], sizes = [2, 32], strides = [1, 1]} : vector<2x128xf32> to vector<2x32xf32>
    %192 = arith.addf %190, %191 : vector<2x32xf32>
    %193 = arith.negf %192 : vector<2x32xf32>
    %194 = math.exp %193 : vector<2x32xf32>
    %cst_36 = arith.constant 1.000000e+00 : f32
    %195 = vector.broadcast %cst_36 : f32 to vector<2x32xf32>
    %196 = arith.addf %195, %194 : vector<2x32xf32>
    %197 = arith.divf %195, %196 : vector<2x32xf32>
    %198 = vector.extract_strided_slice %185 {offsets = [0, 32], sizes = [2, 32], strides = [1, 1]} : vector<2x128xf32> to vector<2x32xf32>
    %199 = vector.extract_strided_slice %189 {offsets = [0, 32], sizes = [2, 32], strides = [1, 1]} : vector<2x128xf32> to vector<2x32xf32>
    %200 = arith.addf %198, %199 : vector<2x32xf32>
    %201 = arith.negf %200 : vector<2x32xf32>
    %202 = math.exp %201 : vector<2x32xf32>
    %cst_37 = arith.constant 1.000000e+00 : f32
    %203 = vector.broadcast %cst_37 : f32 to vector<2x32xf32>
    %204 = arith.addf %203, %202 : vector<2x32xf32>
    %205 = arith.divf %203, %204 : vector<2x32xf32>
    %206 = vector.extract_strided_slice %185 {offsets = [0, 64], sizes = [2, 32], strides = [1, 1]} : vector<2x128xf32> to vector<2x32xf32>
    %207 = vector.extract_strided_slice %189 {offsets = [0, 64], sizes = [2, 32], strides = [1, 1]} : vector<2x128xf32> to vector<2x32xf32>
    %208 = arith.mulf %197, %207 : vector<2x32xf32>
    %209 = arith.addf %206, %208 : vector<2x32xf32>
    %210 = math.tanh %209 : vector<2x32xf32>
    %cst_38 = arith.constant 1.000000e+00 : f32
    %211 = vector.broadcast %cst_38 : f32 to vector<2x32xf32>
    %212 = arith.subf %211, %205 : vector<2x32xf32>
    %213 = arith.mulf %212, %210 : vector<2x32xf32>
    %214 = arith.mulf %205, %180 : vector<2x32xf32>
    %215 = arith.addf %213, %214 : vector<2x32xf32>
    %216 = vector.extract_strided_slice %42 {offsets = [0, 4], sizes = [2, 1], strides = [1, 1]} : vector<2x8xf32> to vector<2x1xf32>
    %217 = vector.broadcast %216 : vector<2x1xf32> to vector<2x32xf32>
    %218 = arith.mulf %217, %215 : vector<2x32xf32>
    %219 = arith.addf %184, %218 : vector<2x32xf32>
    %220 = vector.extract_strided_slice %39 {offsets = [10, 0], sizes = [2, 128], strides = [1, 1]} : vector<16x128xf32> to vector<2x128xf32>
    %221 = arith.truncf %215 : vector<2x32xf32> to vector<2x32xbf16>
    %cst_39 = arith.constant dense<0.000000e+00> : vector<2x128xf32>
    %222 = tpu.matmul %221, %40, %cst_39 {dimension_numbers = #tpu.dot_dimension_numbers<[1], [0], [0], [1], [0, 0, 1, 1], [], []>} : vector<2x32xbf16>, vector<32x128xbf16>, vector<2x128xf32> -> vector<2x128xf32>
    %223 = vector.broadcast %41 : vector<1x128xf32> to vector<2x128xf32>
    %224 = arith.addf %222, %223 : vector<2x128xf32>
    %225 = vector.extract_strided_slice %220 {offsets = [0, 0], sizes = [2, 32], strides = [1, 1]} : vector<2x128xf32> to vector<2x32xf32>
    %226 = vector.extract_strided_slice %224 {offsets = [0, 0], sizes = [2, 32], strides = [1, 1]} : vector<2x128xf32> to vector<2x32xf32>
    %227 = arith.addf %225, %226 : vector<2x32xf32>
    %228 = arith.negf %227 : vector<2x32xf32>
    %229 = math.exp %228 : vector<2x32xf32>
    %cst_40 = arith.constant 1.000000e+00 : f32
    %230 = vector.broadcast %cst_40 : f32 to vector<2x32xf32>
    %231 = arith.addf %230, %229 : vector<2x32xf32>
    %232 = arith.divf %230, %231 : vector<2x32xf32>
    %233 = vector.extract_strided_slice %220 {offsets = [0, 32], sizes = [2, 32], strides = [1, 1]} : vector<2x128xf32> to vector<2x32xf32>
    %234 = vector.extract_strided_slice %224 {offsets = [0, 32], sizes = [2, 32], strides = [1, 1]} : vector<2x128xf32> to vector<2x32xf32>
    %235 = arith.addf %233, %234 : vector<2x32xf32>
    %236 = arith.negf %235 : vector<2x32xf32>
    %237 = math.exp %236 : vector<2x32xf32>
    %cst_41 = arith.constant 1.000000e+00 : f32
    %238 = vector.broadcast %cst_41 : f32 to vector<2x32xf32>
    %239 = arith.addf %238, %237 : vector<2x32xf32>
    %240 = arith.divf %238, %239 : vector<2x32xf32>
    %241 = vector.extract_strided_slice %220 {offsets = [0, 64], sizes = [2, 32], strides = [1, 1]} : vector<2x128xf32> to vector<2x32xf32>
    %242 = vector.extract_strided_slice %224 {offsets = [0, 64], sizes = [2, 32], strides = [1, 1]} : vector<2x128xf32> to vector<2x32xf32>
    %243 = arith.mulf %232, %242 : vector<2x32xf32>
    %244 = arith.addf %241, %243 : vector<2x32xf32>
    %245 = math.tanh %244 : vector<2x32xf32>
    %cst_42 = arith.constant 1.000000e+00 : f32
    %246 = vector.broadcast %cst_42 : f32 to vector<2x32xf32>
    %247 = arith.subf %246, %240 : vector<2x32xf32>
    %248 = arith.mulf %247, %245 : vector<2x32xf32>
    %249 = arith.mulf %240, %215 : vector<2x32xf32>
    %250 = arith.addf %248, %249 : vector<2x32xf32>
    %251 = vector.extract_strided_slice %42 {offsets = [0, 5], sizes = [2, 1], strides = [1, 1]} : vector<2x8xf32> to vector<2x1xf32>
    %252 = vector.broadcast %251 : vector<2x1xf32> to vector<2x32xf32>
    %253 = arith.mulf %252, %250 : vector<2x32xf32>
    %254 = arith.addf %219, %253 : vector<2x32xf32>
    %255 = vector.extract_strided_slice %39 {offsets = [12, 0], sizes = [2, 128], strides = [1, 1]} : vector<16x128xf32> to vector<2x128xf32>
    %256 = arith.truncf %250 : vector<2x32xf32> to vector<2x32xbf16>
    %cst_43 = arith.constant dense<0.000000e+00> : vector<2x128xf32>
    %257 = tpu.matmul %256, %40, %cst_43 {dimension_numbers = #tpu.dot_dimension_numbers<[1], [0], [0], [1], [0, 0, 1, 1], [], []>} : vector<2x32xbf16>, vector<32x128xbf16>, vector<2x128xf32> -> vector<2x128xf32>
    %258 = vector.broadcast %41 : vector<1x128xf32> to vector<2x128xf32>
    %259 = arith.addf %257, %258 : vector<2x128xf32>
    %260 = vector.extract_strided_slice %255 {offsets = [0, 0], sizes = [2, 32], strides = [1, 1]} : vector<2x128xf32> to vector<2x32xf32>
    %261 = vector.extract_strided_slice %259 {offsets = [0, 0], sizes = [2, 32], strides = [1, 1]} : vector<2x128xf32> to vector<2x32xf32>
    %262 = arith.addf %260, %261 : vector<2x32xf32>
    %263 = arith.negf %262 : vector<2x32xf32>
    %264 = math.exp %263 : vector<2x32xf32>
    %cst_44 = arith.constant 1.000000e+00 : f32
    %265 = vector.broadcast %cst_44 : f32 to vector<2x32xf32>
    %266 = arith.addf %265, %264 : vector<2x32xf32>
    %267 = arith.divf %265, %266 : vector<2x32xf32>
    %268 = vector.extract_strided_slice %255 {offsets = [0, 32], sizes = [2, 32], strides = [1, 1]} : vector<2x128xf32> to vector<2x32xf32>
    %269 = vector.extract_strided_slice %259 {offsets = [0, 32], sizes = [2, 32], strides = [1, 1]} : vector<2x128xf32> to vector<2x32xf32>
    %270 = arith.addf %268, %269 : vector<2x32xf32>
    %271 = arith.negf %270 : vector<2x32xf32>
    %272 = math.exp %271 : vector<2x32xf32>
    %cst_45 = arith.constant 1.000000e+00 : f32
    %273 = vector.broadcast %cst_45 : f32 to vector<2x32xf32>
    %274 = arith.addf %273, %272 : vector<2x32xf32>
    %275 = arith.divf %273, %274 : vector<2x32xf32>
    %276 = vector.extract_strided_slice %255 {offsets = [0, 64], sizes = [2, 32], strides = [1, 1]} : vector<2x128xf32> to vector<2x32xf32>
    %277 = vector.extract_strided_slice %259 {offsets = [0, 64], sizes = [2, 32], strides = [1, 1]} : vector<2x128xf32> to vector<2x32xf32>
    %278 = arith.mulf %267, %277 : vector<2x32xf32>
    %279 = arith.addf %276, %278 : vector<2x32xf32>
    %280 = math.tanh %279 : vector<2x32xf32>
    %cst_46 = arith.constant 1.000000e+00 : f32
    %281 = vector.broadcast %cst_46 : f32 to vector<2x32xf32>
    %282 = arith.subf %281, %275 : vector<2x32xf32>
    %283 = arith.mulf %282, %280 : vector<2x32xf32>
    %284 = arith.mulf %275, %250 : vector<2x32xf32>
    %285 = arith.addf %283, %284 : vector<2x32xf32>
    %286 = vector.extract_strided_slice %42 {offsets = [0, 6], sizes = [2, 1], strides = [1, 1]} : vector<2x8xf32> to vector<2x1xf32>
    %287 = vector.broadcast %286 : vector<2x1xf32> to vector<2x32xf32>
    %288 = arith.mulf %287, %285 : vector<2x32xf32>
    %289 = arith.addf %254, %288 : vector<2x32xf32>
    %290 = vector.extract_strided_slice %39 {offsets = [14, 0], sizes = [2, 128], strides = [1, 1]} : vector<16x128xf32> to vector<2x128xf32>
    %291 = arith.truncf %285 : vector<2x32xf32> to vector<2x32xbf16>
    %cst_47 = arith.constant dense<0.000000e+00> : vector<2x128xf32>
    %292 = tpu.matmul %291, %40, %cst_47 {dimension_numbers = #tpu.dot_dimension_numbers<[1], [0], [0], [1], [0, 0, 1, 1], [], []>} : vector<2x32xbf16>, vector<32x128xbf16>, vector<2x128xf32> -> vector<2x128xf32>
    %293 = vector.broadcast %41 : vector<1x128xf32> to vector<2x128xf32>
    %294 = arith.addf %292, %293 : vector<2x128xf32>
    %295 = vector.extract_strided_slice %290 {offsets = [0, 0], sizes = [2, 32], strides = [1, 1]} : vector<2x128xf32> to vector<2x32xf32>
    %296 = vector.extract_strided_slice %294 {offsets = [0, 0], sizes = [2, 32], strides = [1, 1]} : vector<2x128xf32> to vector<2x32xf32>
    %297 = arith.addf %295, %296 : vector<2x32xf32>
    %298 = arith.negf %297 : vector<2x32xf32>
    %299 = math.exp %298 : vector<2x32xf32>
    %cst_48 = arith.constant 1.000000e+00 : f32
    %300 = vector.broadcast %cst_48 : f32 to vector<2x32xf32>
    %301 = arith.addf %300, %299 : vector<2x32xf32>
    %302 = arith.divf %300, %301 : vector<2x32xf32>
    %303 = vector.extract_strided_slice %290 {offsets = [0, 32], sizes = [2, 32], strides = [1, 1]} : vector<2x128xf32> to vector<2x32xf32>
    %304 = vector.extract_strided_slice %294 {offsets = [0, 32], sizes = [2, 32], strides = [1, 1]} : vector<2x128xf32> to vector<2x32xf32>
    %305 = arith.addf %303, %304 : vector<2x32xf32>
    %306 = arith.negf %305 : vector<2x32xf32>
    %307 = math.exp %306 : vector<2x32xf32>
    %cst_49 = arith.constant 1.000000e+00 : f32
    %308 = vector.broadcast %cst_49 : f32 to vector<2x32xf32>
    %309 = arith.addf %308, %307 : vector<2x32xf32>
    %310 = arith.divf %308, %309 : vector<2x32xf32>
    %311 = vector.extract_strided_slice %290 {offsets = [0, 64], sizes = [2, 32], strides = [1, 1]} : vector<2x128xf32> to vector<2x32xf32>
    %312 = vector.extract_strided_slice %294 {offsets = [0, 64], sizes = [2, 32], strides = [1, 1]} : vector<2x128xf32> to vector<2x32xf32>
    %313 = arith.mulf %302, %312 : vector<2x32xf32>
    %314 = arith.addf %311, %313 : vector<2x32xf32>
    %315 = math.tanh %314 : vector<2x32xf32>
    %cst_50 = arith.constant 1.000000e+00 : f32
    %316 = vector.broadcast %cst_50 : f32 to vector<2x32xf32>
    %317 = arith.subf %316, %310 : vector<2x32xf32>
    %318 = arith.mulf %317, %315 : vector<2x32xf32>
    %319 = arith.mulf %310, %285 : vector<2x32xf32>
    %320 = arith.addf %318, %319 : vector<2x32xf32>
    %321 = vector.extract_strided_slice %42 {offsets = [0, 7], sizes = [2, 1], strides = [1, 1]} : vector<2x8xf32> to vector<2x1xf32>
    %322 = vector.broadcast %321 : vector<2x1xf32> to vector<2x32xf32>
    %323 = arith.mulf %322, %320 : vector<2x32xf32>
    %324 = arith.addf %289, %323 : vector<2x32xf32>
    %325 = arith.truncf %324 : vector<2x32xf32> to vector<2x32xbf16>
    %c0_51 = arith.constant 0 : index
    %c0_52 = arith.constant 0 : index
    %326 = vector.load %arg4[%c0_51, %c0_52] : memref<24x32xbf16, #tpu.memory_space<vmem>>, vector<24x32xbf16>
    %cst_53 = arith.constant dense<0.000000e+00> : vector<2x24xf32>
    %327 = tpu.matmul %325, %326, %cst_53 {dimension_numbers = #tpu.dot_dimension_numbers<[1], [1], [0], [0], [0, 0, 1, 0], [], []>} : vector<2x32xbf16>, vector<24x32xbf16>, vector<2x24xf32> -> vector<2x24xf32>
    %c0_54 = arith.constant 0 : index
    %c0_55 = arith.constant 0 : index
    %328 = vector.load %arg5[%c0_54, %c0_55] : memref<1x24xf32, #tpu.memory_space<vmem>>, vector<1x24xf32>
    %329 = vector.broadcast %328 : vector<1x24xf32> to vector<2x24xf32>
    %330 = arith.addf %327, %329 : vector<2x24xf32>
    %c0_56 = arith.constant 0 : index
    %c0_57 = arith.constant 0 : index
    %331 = vector.load %arg1[%c0_56, %c0_57] : memref<2x128xi32, #tpu.memory_space<vmem>>, vector<2x128xi32>
    %332 = vector.shape_cast %331 : vector<2x128xi32> to vector<2x1x128xi32>
    %333 = tpu.iota {dimensions = array<i32: 1>} : vector<2x24x128xi32>
    %334 = vector.broadcast %332 : vector<2x1x128xi32> to vector<2x24x128xi32>
    %335 = arith.cmpi eq, %334, %333 : vector<2x24x128xi32>
    %336 = arith.extui %335 : vector<2x24x128xi1> to vector<2x24x128xi32>
    %337 = arith.sitofp %336 : vector<2x24x128xi32> to vector<2x24x128xf32>
    %338 = arith.truncf %337 : vector<2x24x128xf32> to vector<2x24x128xbf16>
    %339 = vector.shape_cast %330 : vector<2x24xf32> to vector<2x1x24xf32>
    %340 = arith.truncf %339 : vector<2x1x24xf32> to vector<2x1x24xbf16>
    %cst_58 = arith.constant dense<0.000000e+00> : vector<2x1x128xf32>
    %341 = tpu.matmul %340, %338, %cst_58 {dimension_numbers = #tpu.dot_dimension_numbers<[2], [1], [1], [2], [0, 0, 0, 1, 1, 2], [0], [0]>} : vector<2x1x24xbf16>, vector<2x24x128xbf16>, vector<2x1x128xf32> -> vector<2x1x128xf32>
    %342 = vector.shape_cast %341 : vector<2x1x128xf32> to vector<2x128xf32>
    %c0_59 = arith.constant 0 : index
    %c0_60 = arith.constant 0 : index
    %343 = vector.load %arg10[%c0_59, %c0_60] : memref<2x128xf32, #tpu.memory_space<vmem>>, vector<2x128xf32>
    tpu.vector_store %arg10[%c0_59, %c0_60], %342 {strides = array<i32>} : memref<2x128xf32, #tpu.memory_space<vmem>>, vector<2x128xf32>,
    return
  }
}

</mosaic_0001>

<bundles_post_ra>
// kernel: dream_forward.1
= control target key start
LH: loop header
LB: loop body
LE: loop exit
PB: predicated region body
PF: predicated region fallthrough
CT: control target
= control target key end

     0   :  { %v1672_v0 = vmov 1   ;;  %v1673_v1 = vmov 0   ;;  %v1674_v5 = vmov 0.0   ;;  %vm69_vm0 = vcmask 1043456   ;;  %s1678_s27 = smov 64   ;;  %s2037_s0 = inlined_call_operand.vmem [shape: s32[16,4], index: 0, kind: input, shape index: {}]   ;;  %s2038_s3 = inlined_call_operand.vmem [shape: bf16[24,32], index: 3, kind: input, shape index: {}]   ;;  %s2039_s7 = inlined_call_operand.vmem [shape: bf16[32,128], index: 7, kind: input, shape index: {}]   ;;  %s2040_s6 = inlined_call_operand.vmem [shape: bf16[32,128], index: 6, kind: input, shape index: {}]   ;;  %s2041_s9 = inlined_call_operand.vmem [shape: f32[1,128], index: 9, kind: input, shape index: {}]   ;;  %s2042_s8 = inlined_call_operand.vmem [shape: f32[1,128], index: 8, kind: input, shape index: {}]   ;;  %s2043_s2 = inlined_call_operand.vmem [shape: f32[2,8], index: 2, kind: input, shape index: {}]   ;;  %s2044_s4 = inlined_call_operand.vmem [shape: bf16[24,32], index: 4, kind: input, shape index: {}]   ;;  %s2045_s1 = inlined_call_operand.vmem [shape: s32[2,128], index: 1, kind: input, shape index: {}]   ;;  %s2046_s5 = inlined_call_operand.vmem [shape: f32[1,24], index: 5, kind: input, shape index: {}]   ;;  %s2047_s10 = inlined_call_operand.vmem [shape: f32[2,128], index: 10, kind: output, shape index: {}]  }
   0x1   :  { %1602 = vset.pattern.permute.xlu1 %v1672_v0  ;;  %1601 = vset.pattern.permute.xlu0 %v1673_v1  ;;  %v39_v2 = vld [vmem:[%s2037_s0] sm:$0xff]  ;;  %v40_v4 = vld [vmem:[%s2037_s0 + $0x8] sm:$0xff]  ;;  %vm1675_vm1 = vmmov 0   ;;  %v1676_v8 = vmov 2   ;;  %v1677_v9 = vmov 3   ;;  %v41_v10 = vlaneseq }
   0x2   :  { %115 = vperm.xlu1 %1602, %v39_v2   ;;  %44 = vperm.xlu0 %1601, %v39_v2   ;;  %v1616_v3 = vld [vmem:[%s2038_s3] sm:$0xff]   ;;  %v1617_v6 = vld [vmem:[%s2038_s3 + $0x8] ss:$0 sps:$4 sm:$0xff]   ;;  %vm65_vm6 = vcmask 195584   ;;  %vm315_vm11 = vcmask 261120  }
   0x3   :  { %1458 = vmatprep.subr.bf16.mxu0 %v1674_v5  ;;  %1466 = vmatprep.subr.bf16.mxu1 %v1674_v5  ;;  %v71_v7 = vsel %vm69_vm0, %v1617_v6, 0  ;;  %v42_v11 = vand.u32 127, %v41_v10  ;;  %v1790_v31 = vld [vmem:[%s2039_s7] sm:$0xff]   ;;  %v1800_v33 = vld [vmem:[%s2039_s7 + $0x8] sm:$0xff]  }
   0x4   :  { %1459 = vmatpush3.bf16.msra.mxu0 %v1616_v3  ;;  %1467 = vmatpush3.bf16.msra.mxu1 %v1616_v3  ;;  %v1620_v34 = vld [vmem:[%s2040_s6] sm:$0xff]   ;;  %v1621_v35 = vld [vmem:[%s2040_s6 + $0x8] sm:$0xff]  }
   0x5   :  { %1460 = vmatprep.subr.bf16.mxu0 %v1674_v5  ;;  %1468 = vmatprep.subr.bf16.mxu1 %v1674_v5  ;;  %v1825_v59 = vld [vmem:[%s2041_s9] ss:$0 sm:$0xff] }
   0x6   :  { %118 = vperm.xlu1 %1602, %v40_v4   ;;  %47 = vperm.xlu0 %1601, %v40_v4  }
   0x7   :  { %1462 = vmatprep.mubr.msk.bf16.mxu0 %vm1675_vm1, %v1674_v5  ;;  %1470 = vmatprep.mubr.msk.bf16.mxu1 %vm1675_vm1, %v1674_v5 }
   0x8   :  { %1461 = vmatpush3.bf16.msra.mxu0 %v71_v7  ;;  %1469 = vmatpush3.bf16.msra.mxu1 %v71_v7 }
   0x9   :  { %1474 = vmatprep.subr.bf16.mxu0 %v1674_v5  ;;  %1482 = vmatprep.subr.bf16.mxu1 %v1674_v5 }
   0xa   :  { %1604 = vset.pattern.permute.xlu1 %v1676_v8  ;;  %1603 = vset.pattern.permute.xlu0 %v1676_v8 }
   0xb   :  { %177 = vperm.xlu1 %1604, %v40_v4   ;;  %174 = vperm.xlu0 %1603, %v39_v2  }
   0xf   :  { %1605 = vset.pattern.permute.xlu1 %v1677_v9  ;;  %1606 = vset.pattern.permute.xlu0 %v1677_v9 }
  0x10   :  { %233 = vperm.xlu1 %1605, %v39_v2   ;;  %236 = vperm.xlu0 %1606, %v40_v4   ;;  %v1371_v2 = vld [vmem:[%s2042_s8] ss:$0 sm:$0xff]  ;;  %s1679_s8 = smov 96  }
  0x14   :  { %1607 = vset.pattern.permute.xlu1 %v1672_v0  ;;  %1608 = vset.pattern.permute.xlu0 %v1676_v8 }
  0x81   :  { %v116_v12 = vpop.permute.xlu1 %115  ;;  %v45_v13 = vpop.permute.xlu0 %44 }
  0x82   :  { %vm120_vm2 = vcmp.eq.s32.totalorder %v116_v12, %v42_v11  ;;  %vm49_vm3 = vcmp.eq.s32.totalorder %v45_v13, %v42_v11 }
  0x83   :  { %v1362_v16 = vsel %vm120_vm2, 1.0, %v1674_v5  ;;  %v1357_v17 = vsel %vm49_vm3, 1.0, %v1674_v5 }
  0x85   :  { %v119_v14 = vpop.permute.xlu1 %118  ;;  %v48_v15 = vpop.permute.xlu0 %47 }
  0x86   :  { %vm121_vm4 = vcmp.eq.s32.totalorder %v119_v14, %v42_v11  ;;  %vm50_vm5 = vcmp.eq.s32.totalorder %v48_v15, %v42_v11 }
  0x87   :  { %v1363_v18 = vsel %vm121_vm4, 1.0, %v1674_v5  ;;  %v1358_v19 = vsel %vm50_vm5, 1.0, %v1674_v5 }
  0x88   :  { %v126_v20 = vpack.c.bf16 %v1363_v18, %v1362_v16  ;;  %v55_v21 = vpack.c.bf16 %v1358_v19, %v1357_v17 }
  0x8a   :  { %1471 = vmatmul.mubr.msk.bf16.vlgmr.msra.gmra.mrb[0].mxu1 %vm65_vm6, %v126_v20  ;;  %v178_v22 = vpop.permute.xlu1 %177  ;;  %1463 = vmatmul.mubr.msk.bf16.vlgmr.msra.gmra.mrb[0].mxu0 %vm65_vm6, %v55_v21  ;;  %v175_v23 = vpop.permute.xlu0 %174 }
  0x8b   :  { %vm180_vm7 = vcmp.eq.s32.totalorder %v178_v22, %v42_v11  ;;  %1475 = vmatpush3.bf16.msra.mxu0 %v1616_v3  ;;  %vm179_vm8 = vcmp.eq.s32.totalorder %v175_v23, %v42_v11  ;;  %1483 = vmatpush3.bf16.msra.mxu1 %v1616_v3 }
  0x8c   :  { %1476 = vmatprep.subr.bf16.mxu0 %v1674_v5  ;;  %1484 = vmatprep.subr.bf16.mxu1 %v1674_v5  ;;  %v1366_v24 = vsel %vm180_vm7, 1.0, %v1674_v5  ;;  %v1365_v25 = vsel %vm179_vm8, 1.0, %v1674_v5  ;;  %vm1349_vm7 = vcmask 1041409  }
  0x8d   :  { %1478 = vmatprep.mubr.msk.bf16.mxu0 %vm1675_vm1, %v1674_v5  ;;  %1486 = vmatprep.mubr.msk.bf16.mxu1 %vm1675_vm1, %v1674_v5  ;;  %v185_v28 = vpack.c.bf16 %v1366_v24, %v1365_v25 }
  0x8f   :  { %1477 = vmatpush3.bf16.msra.mxu0 %v71_v7  ;;  %v234_v26 = vpop.permute.xlu1 %233  ;;  %v237_v27 = vpop.permute.xlu0 %236  ;;  %1485 = vmatpush3.bf16.msra.mxu1 %v71_v7 }
  0x90   :  { %vm238_vm9 = vcmp.eq.s32.totalorder %v234_v26, %v42_v11  ;;  %vm239_vm10 = vcmp.eq.s32.totalorder %v237_v27, %v42_v11  ;;  %1498 = vmatprep.subr.bf16.mxu1 %v1674_v5  ;;  %1490 = vmatprep.subr.bf16.mxu0 %v1674_v5 }
  0x91   :  { %v1368_v29 = vsel %vm238_vm9, 1.0, %v1674_v5  ;;  %v1369_v30 = vsel %vm239_vm10, 1.0, %v1674_v5 }
  0x92   :  { %v244_v32 = vpack.c.bf16 %v1369_v30, %v1368_v29  ;;  %1479 = vmatmul.mubr.msk.bf16.vlgmr.msra.gmra.mrb[4].mxu0 %vm65_vm6, %v185_v28 }
  0x93   :  { %1494 = vmatprep.mubr.msk.bf16.mxu0 %vm1675_vm1, %v1674_v5  ;;  %1491 = vmatpush3.bf16.msra.mxu0 %v1620_v34 }
  0x94   :  { %1487 = vmatmul.mubr.msk.bf16.vlgmr.msra.gmra.mrb[4].mxu1 %vm65_vm6, %v244_v32  ;;  %1492 = vmatprep.subr.bf16.mxu0 %v1674_v5 }
  0x95   :  { %1499 = vmatpush3.bf16.msra.mxu1 %v1790_v31  ;;  %1502 = vmatprep.mubr.msk.bf16.mxu1 %vm1675_vm1, %v1674_v5 }
  0x96   :  { %1500 = vmatprep.subr.bf16.mxu1 %v1674_v5 }
  0x97   :  { %1493 = vmatpush3.bf16.msra.mxu0 %v1621_v35 }
  0x98   :  { %1506 = vmatprep.subr.bf16.mxu0 %v1674_v5 }
  0x99   :  { %1501 = vmatpush3.bf16.msra.mxu1 %v1800_v33 }
  0x9a   :  { %1514 = vmatprep.subr.bf16.mxu1 %v1674_v5 }
  0x9c   :  { %1503 = vmatmul.mubr.bf16.vlgmr.msra.gmra.mrb[8].mxu1 %v1673_v1 }
  0x9d   :  { %1515 = vmatpush3.bf16.msra.mxu1 %v1790_v31  ;;  %1518 = vmatprep.mubr.msk.bf16.mxu1 %vm1675_vm1, %v1674_v5 }
  0x9e   :  { %1516 = vmatprep.subr.bf16.mxu1 %v1674_v5 }
  0xa1   :  { %1517 = vmatpush3.bf16.msra.mxu1 %v1800_v33 }
  0xa2   :  { %1530 = vmatprep.subr.bf16.mxu1 %v1674_v5 }
 0x15d   :  { %v107_v36 = vpop.f32.mrb[0].mxu0  ;;  %v164_v37 = vpop.f32.mrb[0].mxu1 }
 0x15e   :  { %v171_v38 = vmax.f32 %v107_v36, %v164_v37  ;;  %v1464_v39 = vpop.f32.mrb[1].mxu0  ;;  %v1472_v40 = vpop.f32.mrb[1].mxu1 }
 0x15f   :  { %v110_v41 = vpop.f32.mrb[2].mxu0  ;;  %v167_v42 = vpop.f32.mrb[2].mxu1 }
 0x160   :  { %v172_v43 = vmax.f32 %v110_v41, %v167_v42  ;;  %v1465_v44 = vpop.f32.mrb[3].mxu0  ;;  %v1473_v45 = vpop.f32.mrb[3].mxu1 }
 0x165   :  { %v223_v46 = vpop.f32.mrb[4].mxu0 }
 0x166   :  { %v230_v47 = vmax.f32 %v171_v38, %v223_v46  ;;  %v1480_v48 = vpop.f32.mrb[5].mxu0 }
 0x167   :  { %v226_v49 = vpop.f32.mrb[6].mxu0  ;;  %v282_v50 = vpop.f32.mrb[4].mxu1 }
 0x168   :  { %v231_v51 = vmax.f32 %v172_v43, %v226_v49  ;;  %v289_v52 = vmax.f32 %v230_v47, %v282_v50  ;;  %v1481_v53 = vpop.f32.mrb[7].mxu0  ;;  %v1488_v54 = vpop.f32.mrb[5].mxu1 }
 0x169   :  { %v285_v55 = vpop.f32.mrb[6].mxu1 }
 0x16a   :  { %v290_v56 = vmax.f32 %v231_v51, %v285_v55  ;;  %v1489_v57 = vpop.f32.mrb[7].mxu1 }
 0x16c   :  { %v291_v58 = vpack.c.bf16 %v290_v56, %v289_v52 }
 0x16e   :  { %1495 = vmatmul.mubr.msk.bf16.vlgmr.msra.gmra.mrb[8].mxu0 %vm315_vm11, %v291_v58 }
 0x16f   :  { %v421_v60 = vpop.f32.mrb[8].mxu1  ;;  %1507 = vmatpush3.bf16.msra.mxu0 %v1790_v31  ;;  %1510 = vmatprep.mubr.msk.bf16.mxu0 %vm1675_vm1, %v1674_v5 }
 0x170   :  { %v422_v61 = vadd.f32 %v1825_v59, %v421_v60  ;;  %v1504_v62 = vpop.f32.mrb[9].mxu1  ;;  %1508 = vmatprep.subr.bf16.mxu0 %v1674_v5 }
 0x171   :  { %v424_v63 = vpop.f32.mrb[10].mxu1 }
 0x172   :  { %v1505_v0 = vpop.f32.mrb[11].mxu1  ;;  %435 = vrot.lane.b32.xlu1 %v422_v61, %s1678_s27 }
 0x173   :  { %1509 = vmatpush3.bf16.msra.mxu0 %v1800_v33 }
 0x174   :  { %1522 = vmatprep.subr.bf16.mxu0 %v1674_v5 }
 0x1e4   :  { %v436_v16 = vpop.permute.xlu1 %435 }
 0x241   :  { %v353_v3 = vpop.f32.mrb[8].mxu0 }
 0x242   :  { %v1839_v4 = vadd.f32 %v1371_v2, %v353_v3  ;;  %v1496_v6 = vpop.f32.mrb[9].mxu0 }
 0x243   :  { %v356_v7 = vpop.f32.mrb[10].mxu0 }
 0x244   :  { %v1841_v8 = vadd.f32 %v1371_v2, %v356_v7  ;;  %v1497_v11 = vpop.f32.mrb[11].mxu0  ;;  %v427_v12 = vadd.f32 %v422_v61, %v1839_v4 }
 0x246   :  { %v1378_v13 = vmul.f32 -1.442695, %v427_v12 }
 0x248   :  { %1624 = vpow2.f32 %v1378_v13 }
 0x252   :  { %v1625_v14 = vpop.eup %1624 }
 0x253   :  { %v431_v15 = vadd.f32 1.0, %v1625_v14 }
 0x255   :  { %1626 = vrcp.f32 %v431_v15 }
 0x25f   :  { %v1627_v17 = vpop.eup %1626 }
 0x260   :  { %v438_v18 = vmul.f32 %v1627_v17, %v436_v16  ;;  %v445_v22 = vsub.f32 1.0, %v1627_v17  ;;  %v451_v24 = vmul.f32 0.0, %v1627_v17 }
 0x262   :  { %440 = vrot.lane.b32.xlu1 %v438_v18, %s1678_s27 }
 0x2d4   :  { %v441_v19 = vpop.permute.xlu1 %440 }
 0x2d5   :  { %v443_v20 = vadd.f32 %v441_v19, %v1839_v4 }
 0x2d7   :  { %1628 = vtanh.f32 %v443_v20 }
 0x2e1   :  { %v1629_v21 = vpop.eup %1628 }
 0x2e2   :  { %447 = vrot.lane.b32.xlu0 %v1629_v21, %s1679_s8 }
 0x354   :  { %v448_v23 = vpop.permute.xlu0 %447 }
 0x355   :  { %v450_v25 = vmul.f32 %v448_v23, %v445_v22 }
 0x357   :  { %v1847_v26 = vadd.f32 %v451_v24, %v450_v25 }
 0x359   :  { %v460_v27 = vpack.c.bf16 %v1847_v26, %v1847_v26  ;;  %v534_v48 = vrot.slane %v1847_v26, 6 }
 0x35b   :  { %462 = vrot.lane.b32.xlu1 %v460_v27, %s1679_s8 }
 0x3cd   :  { %v463_v28 = vpop.permute.xlu1 %462 }
 0x3ce   :  { %1511 = vmatmul.mubr.msk.bf16.vlgmr.msra.gmra.mrb[12].mxu0 %vm315_vm11, %v463_v28 }
 0x3cf   :  { %1523 = vmatpush3.bf16.msra.mxu0 %v1790_v31  ;;  %1526 = vmatprep.mubr.msk.bf16.mxu0 %vm1675_vm1, %v1674_v5 }
 0x3d0   :  { %1524 = vmatprep.subr.bf16.mxu0 %v1674_v5 }
 0x3d3   :  { %1525 = vmatpush3.bf16.msra.mxu0 %v1800_v33 }
 0x3d4   :  { %1538 = vmatprep.subr.bf16.mxu0 %v1674_v5 }
 0x4a1   :  { %v501_v29 = vpop.f32.mrb[12].mxu0 }
 0x4a2   :  { %v502_v30 = vadd.f32 %v1825_v59, %v501_v29  ;;  %v1512_v32 = vpop.f32.mrb[13].mxu0 }
 0x4a3   :  { %v504_v34 = vpop.f32.mrb[14].mxu0 }
 0x4a4   :  { %v508_v35 = vrot.slane %v502_v30, 6  ;;  %v1513_v36 = vpop.f32.mrb[15].mxu0 }
 0x4a6   :  { %517 = vrot.lane.b32.xlu0 %v508_v35, %s1678_s27  ;;  %v510_v37 = vadd.f32 %v508_v35, %v1839_v4 }
 0x4a8   :  { %v1380_v38 = vmul.f32 -1.442695, %v510_v37 }
 0x4aa   :  { %1630 = vpow2.f32 %v1380_v38 }
 0x4b4   :  { %v1631_v39 = vpop.eup %1630 }
 0x4b5   :  { %v514_v40 = vadd.f32 1.0, %v1631_v39 }
 0x4b7   :  { %1632 = vrcp.f32 %v514_v40 }
 0x4c1   :  { %v1633_v41 = vpop.eup %1632 }
 0x4c2   :  { %v527_v47 = vsub.f32 1.0, %v1633_v41  ;;  %v536_v50 = vmul.f32 %v1633_v41, %v534_v48 }
 0x518   :  { %v518_v42 = vpop.permute.xlu0 %517 }
 0x519   :  { %v520_v43 = vmul.f32 %v1633_v41, %v518_v42 }
 0x51b   :  { %522 = vrot.lane.b32.xlu1 %v520_v43, %s1678_s27 }
 0x58d   :  { %v523_v44 = vpop.permute.xlu1 %522 }
 0x58e   :  { %v525_v45 = vadd.f32 %v523_v44, %v1839_v4 }
 0x590   :  { %1634 = vtanh.f32 %v525_v45 }
 0x59a   :  { %v1635_v46 = vpop.eup %1634 }
 0x59b   :  { %529 = vrot.lane.b32.xlu0 %v1635_v46, %s1679_s8 }
 0x60d   :  { %v530_v49 = vpop.permute.xlu0 %529 }
 0x60e   :  { %v532_v51 = vmul.f32 %v530_v49, %v527_v47 }
 0x610   :  { %v1866_v52 = vadd.f32 %v536_v50, %v532_v51 }
 0x612   :  { %v553_v53 = vpack.c.bf16 %v1866_v52, %v1866_v52  ;;  %v627_v16 = vrot.slane %v1866_v52, 6 }
 0x614   :  { %v555_v54 = vrot.slane %v553_v53, 1 }
 0x616   :  { %556 = vrot.lane.b32.xlu1 %v555_v54, %s1679_s8 }
 0x688   :  { %v557_v55 = vpop.permute.xlu1 %556 }
 0x689   :  { %1519 = vmatmul.mubr.msk.bf16.vlgmr.msra.gmra.mrb[12].mxu1 %vm315_vm11, %v557_v55 }
 0x68a   :  { %1531 = vmatpush3.bf16.msra.mxu1 %v1790_v31  ;;  %1534 = vmatprep.mubr.msk.bf16.mxu1 %vm1675_vm1, %v1674_v5 }
 0x68b   :  { %1532 = vmatprep.subr.bf16.mxu1 %v1674_v5 }
 0x68e   :  { %1533 = vmatpush3.bf16.msra.mxu1 %v1800_v33 }
 0x68f   :  { %1546 = vmatprep.subr.bf16.mxu1 %v1674_v5 }
 0x75c   :  { %v595_v56 = vpop.f32.mrb[12].mxu1 }
 0x75d   :  { %v596_v57 = vadd.f32 %v1825_v59, %v595_v56  ;;  %v1520_v58 = vpop.f32.mrb[13].mxu1 }
 0x75e   :  { %v598_v60 = vpop.f32.mrb[14].mxu1 }
 0x75f   :  { %v602_v61 = vrot.slane %v596_v57, 4  ;;  %v1521_v62 = vpop.f32.mrb[15].mxu1 }
 0x761   :  { %611 = vrot.lane.b32.xlu0 %v602_v61, %s1678_s27  ;;  %v604_v63 = vadd.f32 %v602_v61, %v1839_v4 }
 0x763   :  { %v1382_v0 = vmul.f32 -1.442695, %v604_v63 }
 0x765   :  { %1636 = vpow2.f32 %v1382_v0 }
 0x76f   :  { %v1637_v2 = vpop.eup %1636 }
 0x770   :  { %v608_v3 = vadd.f32 1.0, %v1637_v2 }
 0x772   :  { %1638 = vrcp.f32 %v608_v3 }
 0x77c   :  { %v1639_v6 = vpop.eup %1638 }
 0x77d   :  { %v621_v15 = vsub.f32 1.0, %v1639_v6  ;;  %v629_v18 = vmul.f32 %v1639_v6, %v627_v16 }
 0x7d3   :  { %v612_v7 = vpop.permute.xlu0 %611 }
 0x7d4   :  { %v614_v11 = vmul.f32 %v1639_v6, %v612_v7 }
 0x7d6   :  { %616 = vrot.lane.b32.xlu1 %v614_v11, %s1678_s27 }
 0x848   :  { %v617_v12 = vpop.permute.xlu1 %616 }
 0x849   :  { %v619_v13 = vadd.f32 %v617_v12, %v1839_v4 }
 0x84b   :  { %1640 = vtanh.f32 %v619_v13 }
 0x855   :  { %v1641_v14 = vpop.eup %1640 }
 0x856   :  { %623 = vrot.lane.b32.xlu0 %v1641_v14, %s1679_s8 }
 0x8c8   :  { %v624_v17 = vpop.permute.xlu0 %623 }
 0x8c9   :  { %v626_v19 = vmul.f32 %v624_v17, %v621_v15 }
 0x8cb   :  { %v1885_v20 = vadd.f32 %v629_v18, %v626_v19 }
 0x8cd   :  { %v646_v21 = vpack.c.bf16 %v1885_v20, %v1885_v20  ;;  %v720_v44 = vrot.slane %v1885_v20, 6 }
 0x8cf   :  { %v648_v22 = vrot.slane %v646_v21, 2 }
 0x8d1   :  { %649 = vrot.lane.b32.xlu1 %v648_v22, %s1679_s8 }
 0x943   :  { %v650_v23 = vpop.permute.xlu1 %649 }
 0x944   :  { %1527 = vmatmul.mubr.msk.bf16.vlgmr.msra.gmra.mrb[16].mxu0 %vm315_vm11, %v650_v23 }
 0x945   :  { %1539 = vmatpush3.bf16.msra.mxu0 %v1790_v31  ;;  %1542 = vmatprep.mubr.msk.bf16.mxu0 %vm1675_vm1, %v1674_v5 }
 0x946   :  { %1540 = vmatprep.subr.bf16.mxu0 %v1674_v5 }
 0x949   :  { %1541 = vmatpush3.bf16.msra.mxu0 %v1800_v33 }
 0x94a   :  { %1554 = vmatprep.subr.bf16.mxu0 %v1674_v5 }
 0xa17   :  { %v688_v24 = vpop.f32.mrb[16].mxu0 }
 0xa18   :  { %v689_v25 = vadd.f32 %v1825_v59, %v688_v24  ;;  %v1528_v27 = vpop.f32.mrb[17].mxu0 }
 0xa19   :  { %v691_v28 = vpop.f32.mrb[18].mxu0 }
 0xa1a   :  { %v695_v29 = vrot.slane %v689_v25, 2  ;;  %v1529_v30 = vpop.f32.mrb[19].mxu0 }
 0xa1c   :  { %704 = vrot.lane.b32.xlu0 %v695_v29, %s1678_s27  ;;  %v697_v32 = vadd.f32 %v695_v29, %v1839_v4 }
 0xa1e   :  { %v1384_v34 = vmul.f32 -1.442695, %v697_v32 }
 0xa20   :  { %1642 = vpow2.f32 %v1384_v34 }
 0xa2a   :  { %v1643_v35 = vpop.eup %1642 }
 0xa2b   :  { %v701_v36 = vadd.f32 1.0, %v1643_v35 }
 0xa2d   :  { %1644 = vrcp.f32 %v701_v36 }
 0xa37   :  { %v1645_v37 = vpop.eup %1644 }
 0xa38   :  { %v714_v43 = vsub.f32 1.0, %v1645_v37  ;;  %v722_v46 = vmul.f32 %v1645_v37, %v720_v44 }
 0xa8e   :  { %v705_v38 = vpop.permute.xlu0 %704 }
 0xa8f   :  { %v707_v39 = vmul.f32 %v1645_v37, %v705_v38 }
 0xa91   :  { %709 = vrot.lane.b32.xlu1 %v707_v39, %s1678_s27 }
 0xb03   :  { %v710_v40 = vpop.permute.xlu1 %709 }
 0xb04   :  { %v712_v41 = vadd.f32 %v710_v40, %v1839_v4 }
 0xb06   :  { %1646 = vtanh.f32 %v712_v41 }
 0xb10   :  { %v1647_v42 = vpop.eup %1646 }
 0xb11   :  { %716 = vrot.lane.b32.xlu0 %v1647_v42, %s1679_s8 }
 0xb83   :  { %v717_v45 = vpop.permute.xlu0 %716 }
 0xb84   :  { %v719_v47 = vmul.f32 %v717_v45, %v714_v43 }
 0xb86   :  { %v1904_v48 = vadd.f32 %v722_v46, %v719_v47 }
 0xb88   :  { %v739_v49 = vpack.c.bf16 %v1904_v48, %v1904_v48  ;;  %v729_v7 = vrot.slane %v1904_v48, 6 }
 0xb8a   :  { %v741_v50 = vrot.slane %v739_v49, 3 }
 0xb8c   :  { %742 = vrot.lane.b32.xlu1 %v741_v50, %s1679_s8 }
 0xbfe   :  { %v743_v51 = vpop.permute.xlu1 %742 }
 0xbff   :  { %1535 = vmatmul.mubr.msk.bf16.vlgmr.msra.gmra.mrb[16].mxu1 %vm315_vm11, %v743_v51 }
 0xc00   :  { %1547 = vmatpush3.bf16.msra.mxu1 %v1790_v31  ;;  %1550 = vmatprep.mubr.msk.bf16.mxu1 %vm1675_vm1, %v1674_v5 }
 0xc01   :  { %1548 = vmatprep.subr.bf16.mxu1 %v1674_v5 }
 0xc04   :  { %1549 = vmatpush3.bf16.msra.mxu1 %v1800_v33 }
 0xc05   :  { %1562 = vmatprep.subr.bf16.mxu1 %v1674_v5 }
 0xcd2   :  { %v781_v4 = vpop.f32.mrb[16].mxu1 }
 0xcd3   :  { %v782_v53 = vadd.f32 %v1825_v59, %v781_v4  ;;  %v1536_v54 = vpop.f32.mrb[17].mxu1 }
 0xcd4   :  { %v784_v55 = vpop.f32.mrb[18].mxu1 }
 0xcd5   :  { %795 = vrot.lane.b32.xlu0 %v782_v53, %s1678_s27  ;;  %v1537_v56 = vpop.f32.mrb[19].mxu1  ;;  %v787_v57 = vadd.f32 %v782_v53, %v1841_v8 }
 0xcd7   :  { %v1386_v58 = vmul.f32 -1.442695, %v787_v57 }
 0xcd9   :  { %1648 = vpow2.f32 %v1386_v58 }
 0xce3   :  { %v1649_v60 = vpop.eup %1648 }
 0xce4   :  { %v791_v61 = vadd.f32 1.0, %v1649_v60 }
 0xce6   :  { %1650 = vrcp.f32 %v791_v61 }
 0xcf0   :  { %v1651_v62 = vpop.eup %1650 }
 0xcf1   :  { %v805_v11 = vsub.f32 1.0, %v1651_v62  ;;  %v812_v13 = vmul.f32 %v1651_v62, %v729_v7 }
 0xd47   :  { %v796_v63 = vpop.permute.xlu0 %795 }
 0xd48   :  { %v798_v0 = vmul.f32 %v1651_v62, %v796_v63 }
 0xd4a   :  { %800 = vrot.lane.b32.xlu1 %v798_v0, %s1678_s27 }
 0xdbc   :  { %v801_v2 = vpop.permute.xlu1 %800 }
 0xdbd   :  { %v803_v3 = vadd.f32 %v801_v2, %v1841_v8 }
 0xdbf   :  { %1652 = vtanh.f32 %v803_v3 }
 0xdc9   :  { %v1653_v6 = vpop.eup %1652 }
 0xdca   :  { %807 = vrot.lane.b32.xlu0 %v1653_v6, %s1679_s8 }
 0xe3c   :  { %v808_v12 = vpop.permute.xlu0 %807 }
 0xe3d   :  { %v810_v14 = vmul.f32 %v808_v12, %v805_v11 }
 0xe3f   :  { %v1925_v15 = vadd.f32 %v812_v13, %v810_v14 }
 0xe41   :  { %v820_v16 = vpack.c.bf16 %v1925_v15, %v1925_v15  ;;  %v894_v37 = vrot.slane %v1925_v15, 6 }
 0xe43   :  { %822 = vrot.lane.b32.xlu1 %v820_v16, %s1679_s8 }
 0xeb5   :  { %v823_v17 = vpop.permute.xlu1 %822 }
 0xeb6   :  { %1543 = vmatmul.mubr.msk.bf16.vlgmr.msra.gmra.mrb[20].mxu0 %vm315_vm11, %v823_v17 }
 0xeb7   :  { %1555 = vmatpush3.bf16.msra.mxu0 %v1790_v31  ;;  %1558 = vmatprep.mubr.msk.bf16.mxu0 %vm1675_vm1, %v1674_v5 }
 0xeb8   :  { %1556 = vmatprep.subr.bf16.mxu0 %v1674_v5 }
 0xebb   :  { %1557 = vmatpush3.bf16.msra.mxu0 %v1800_v33 }
 0xebc   :  { %1570 = vmatprep.subr.bf16.mxu0 %v1674_v5 }
 0xf89   :  { %v861_v18 = vpop.f32.mrb[20].mxu0 }
 0xf8a   :  { %v862_v19 = vadd.f32 %v1825_v59, %v861_v18  ;;  %v1544_v21 = vpop.f32.mrb[21].mxu0 }
 0xf8b   :  { %v864_v22 = vpop.f32.mrb[22].mxu0 }
 0xf8c   :  { %v868_v23 = vrot.slane %v862_v19, 6  ;;  %v1545_v24 = vpop.f32.mrb[23].mxu0 }
 0xf8e   :  { %877 = vrot.lane.b32.xlu0 %v868_v23, %s1678_s27  ;;  %v870_v31 = vadd.f32 %v868_v23, %v1841_v8 }
 0xf90   :  { %v1388_v25 = vmul.f32 -1.442695, %v870_v31 }
 0xf92   :  { %1654 = vpow2.f32 %v1388_v25 }
 0xf9c   :  { %v1655_v27 = vpop.eup %1654 }
 0xf9d   :  { %v874_v28 = vadd.f32 1.0, %v1655_v27 }
 0xf9f   :  { %1656 = vrcp.f32 %v874_v28 }
 0xfa9   :  { %v1657_v29 = vpop.eup %1656 }
 0xfaa   :  { %v887_v36 = vsub.f32 1.0, %v1657_v29  ;;  %v896_v39 = vmul.f32 %v1657_v29, %v894_v37  ;;  %v1682_v37 = vmov 5  }
0x1000   :  { %v878_v33 = vpop.permute.xlu0 %877 }
0x1001   :  { %v880_v30 = vmul.f32 %v1657_v29, %v878_v33  ;;  %v543_v33 = vrot.slane %v1866_v52, 2 }
0x1003   :  { %882 = vrot.lane.b32.xlu1 %v880_v30, %s1678_s27  ;;  %v1680_v30 = vmov 6  }
0x1075   :  { %v883_v32 = vpop.permute.xlu1 %882 }
0x1076   :  { %v885_v34 = vadd.f32 %v883_v32, %v1841_v8  ;;  %v636_v32 = vrot.slane %v1885_v20, 4 }
0x1078   :  { %1658 = vtanh.f32 %v885_v34  ;;  %v1681_v34 = vmov 7  }
0x1082   :  { %v1659_v35 = vpop.eup %1658 }
0x1083   :  { %889 = vrot.lane.b32.xlu0 %v1659_v35, %s1679_s8 }
0x10f5   :  { %v890_v38 = vpop.permute.xlu0 %889 }
0x10f6   :  { %v892_v40 = vmul.f32 %v890_v38, %v887_v36 }
0x10f8   :  { %v1944_v41 = vadd.f32 %v896_v39, %v892_v40 }
0x10fa   :  { %v913_v42 = vpack.c.bf16 %v1944_v41, %v1944_v41  ;;  %v987_v0 = vrot.slane %v1944_v41, 6 }
0x10fc   :  { %v915_v43 = vrot.slane %v913_v42, 1 }
0x10fe   :  { %916 = vrot.lane.b32.xlu1 %v915_v43, %s1679_s8 }
0x1170   :  { %v917_v44 = vpop.permute.xlu1 %916 }
0x1171   :  { %1551 = vmatmul.mubr.msk.bf16.vlgmr.msra.gmra.mrb[20].mxu1 %vm315_vm11, %v917_v44 }
0x1172   :  { %1566 = vmatprep.mubr.msk.bf16.mxu1 %vm1675_vm1, %v1674_v5 }
0x1244   :  { %v955_v45 = vpop.f32.mrb[20].mxu1 }
0x1245   :  { %v956_v46 = vadd.f32 %v1825_v59, %v955_v45  ;;  %v1552_v47 = vpop.f32.mrb[21].mxu1 }
0x1246   :  { %v958_v49 = vpop.f32.mrb[22].mxu1 }
0x1247   :  { %v962_v50 = vrot.slane %v956_v46, 4  ;;  %v1553_v51 = vpop.f32.mrb[23].mxu1 }
0x1249   :  { %971 = vrot.lane.b32.xlu0 %v962_v50, %s1678_s27  ;;  %v964_v4 = vadd.f32 %v962_v50, %v1841_v8 }
0x124b   :  { %v1390_v53 = vmul.f32 -1.442695, %v964_v4 }
0x124d   :  { %1660 = vpow2.f32 %v1390_v53 }
0x1257   :  { %v1661_v54 = vpop.eup %1660 }
0x1258   :  { %v968_v55 = vadd.f32 1.0, %v1661_v54 }
0x125a   :  { %1662 = vrcp.f32 %v968_v55 }
0x1264   :  { %v1663_v56 = vpop.eup %1662 }
0x1265   :  { %v981_v63 = vsub.f32 1.0, %v1663_v56  ;;  %v989_v3 = vmul.f32 %v1663_v56, %v987_v0 }
0x12bb   :  { %v972_v57 = vpop.permute.xlu0 %971 }
0x12bc   :  { %v974_v58 = vmul.f32 %v1663_v56, %v972_v57 }
0x12be   :  { %976 = vrot.lane.b32.xlu1 %v974_v58, %s1678_s27 }
0x1330   :  { %v977_v60 = vpop.permute.xlu1 %976 }
0x1331   :  { %v979_v61 = vadd.f32 %v977_v60, %v1841_v8  ;;  %v1622_v60 = vld [vmem:[%s2044_s4] sm:$0xff]  }
0x1333   :  { %1664 = vtanh.f32 %v979_v61  ;;  %v1125_v61 = vsel %vm315_vm11, %v1622_v60, 0 }
0x1334   :  { %1563 = vmatpush3.bf16.xpose.msra.mxu1 %v1125_v61 }
0x1335   :  { %1564 = vmatprep.subr.bf16.mxu1 %v1674_v5 }
0x133d   :  { %v1665_v62 = vpop.eup %1664 }
0x133e   :  { %983 = vrot.lane.b32.xlu0 %v1665_v62, %s1679_s8  ;;  %v1623_v62 = vld [vmem:[%s2044_s4 + $0x8] ss:$0 sps:$4 sm:$0xff]  }
0x13b0   :  { %v984_v2 = vpop.permute.xlu0 %983 }
0x13b1   :  { %v986_v6 = vmul.f32 %v984_v2, %v981_v63  ;;  %v1128_v2 = vsel %vm315_vm11, %v1623_v62, 0 }
0x13b2   :  { %1565 = vmatpush3.bf16.xpose.msra.mxu1 %v1128_v2 }
0x13b3   :  { %v1959_v11 = vadd.f32 %v989_v3, %v986_v6 }
0x13b5   :  { %v1006_v12 = vpack.c.bf16 %v1959_v11, %v1959_v11  ;;  %v996_v35 = vrot.slane %v1959_v11, 4  ;;  %v1080_v43 = vrot.slane %v1959_v11, 6 }
0x13b7   :  { %v1008_v13 = vrot.slane %v1006_v12, 2 }
0x13b9   :  { %1009 = vrot.lane.b32.xlu1 %v1008_v13, %s1679_s8 }
0x142b   :  { %v1010_v14 = vpop.permute.xlu1 %1009 }
0x142c   :  { %1559 = vmatmul.mubr.msk.bf16.vlgmr.msra.gmra.mrb[24].mxu0 %vm315_vm11, %v1010_v14 }
0x142d   :  { %1574 = vmatprep.mubr.msk.bf16.mxu0 %vm1675_vm1, %v1674_v5 }
0x14ff   :  { %v1048_v16 = vpop.f32.mrb[24].mxu0 }
0x1500   :  { %v1049_v17 = vadd.f32 %v1825_v59, %v1048_v16  ;;  %v1560_v18 = vpop.f32.mrb[25].mxu0  ;;  %v365_v59 = vld [vmem:[%s2043_s2] sm:$0x3]  ;;  %s1684_s2 = smov 32  }
0x1501   :  { %v1051_v19 = vpop.f32.mrb[26].mxu0 }
0x1502   :  { %v1055_v21 = vrot.slane %v1049_v17, 2  ;;  %v1561_v22 = vpop.f32.mrb[27].mxu0 }
0x1504   :  { %1064 = vrot.lane.b32.xlu0 %v1055_v21, %s1678_s27  ;;  %v1057_v23 = vadd.f32 %v1055_v21, %v1841_v8 }
0x1506   :  { %v1392_v24 = vmul.f32 -1.442695, %v1057_v23 }
0x1508   :  { %1666 = vpow2.f32 %v1392_v24 }
0x1512   :  { %v1667_v31 = vpop.eup %1666 }
0x1513   :  { %v1061_v25 = vadd.f32 1.0, %v1667_v31 }
0x1515   :  { %1668 = vrcp.f32 %v1061_v25 }
0x151f   :  { %v1669_v27 = vpop.eup %1668 }
0x1520   :  { %v1074_v42 = vsub.f32 1.0, %v1669_v27  ;;  %v1082_v45 = vmul.f32 %v1669_v27, %v1080_v43 }
0x1576   :  { %v1065_v28 = vpop.permute.xlu0 %1064 }
0x1577   :  { %v1067_v29 = vmul.f32 %v1669_v27, %v1065_v28 }
0x1579   :  { %1069 = vrot.lane.b32.xlu1 %v1067_v29, %s1678_s27 }
0x157d   :  { %539 = vperm.xlu1 %1607, %v365_v59  }
0x1581   :  { %1609 = vset.pattern.permute.xlu1 %v1677_v9 }
0x1582   :  { %725 = vperm.xlu1 %1609, %v365_v59  }
0x1586   :  { %544 = vrot.lane.b32.xlu1 %v543_v33, %s1679_s8 }
0x1587   :  { %1611 = vset.pattern.permute.xlu1 %v1680_v30  ;;  %v1183_v30 = vshrl.u32 %v41_v10, 7 }
0x158a   :  { %637 = vrot.lane.b32.xlu1 %v636_v32, %s1679_s8 }
0x158e   :  { %992 = vperm.xlu1 %1611, %v365_v59  }
0x1592   :  { %1612 = vset.pattern.permute.xlu1 %v1681_v34 }
0x1593   :  { %1085 = vperm.xlu1 %1612, %v365_v59  }
0x1597   :  { %997 = vrot.lane.b32.xlu1 %v996_v35, %s1679_s8  ;;  %v1199_v35 = vsub.s32 0, %v1183_v30 }
0x1598   :  { %1613 = vset.pattern.permute.xlu1 %v1673_v1  ;;  %v1683_v1 = vmov 4  }
0x159b   :  { %455 = vperm.xlu1 %1613, %v365_v59  }
0x15eb   :  { %v1070_v9 = vpop.permute.xlu1 %1069 }
0x15ec   :  { %v1072_v52 = vadd.f32 %v1070_v9, %v1841_v8  ;;  %v903_v8 = vrot.slane %v1944_v41, 2  ;;  %v1195_v9 = vadd.s32 8, %v1183_v30 }
0x15ee   :  { %1670 = vtanh.f32 %v1072_v52 }
0x15f8   :  { %v1671_v36 = vpop.eup %1670 }
0x15f9   :  { %1076 = vrot.lane.b32.xlu0 %v1671_v36, %s1679_s8  ;;  %v1196_v36 = vadd.s32 16, %v1183_v30 }
0x15fc   :  { %v540_v20 = vpop.permute.xlu1 %539 }
0x15fd   :  { %632 = vperm.xlu0 %1608, %v365_v59  }
0x1601   :  { %1610 = vset.pattern.permute.xlu0 %v1682_v37  ;;  %v726_v38 = vpop.permute.xlu1 %725 }
0x1602   :  { %899 = vperm.xlu0 %1610, %v365_v59  }
0x1605   :  { %v545_v39 = vpop.permute.xlu1 %544 }
0x1606   :  { %v547_v40 = vmul.f32 %v545_v39, %v540_v20  ;;  %730 = vrot.lane.b32.xlu0 %v729_v7, %s1679_s8  ;;  %v1686_v20 = vmov 1.0|1.0  }
0x1607   :  { %1614 = vset.pattern.permute.xlu0 %v1683_v1 }
0x1608   :  { %549 = vrot.lane.b32.xlu1 %v547_v40, %s1684_s2 }
0x1609   :  { %v638_v48 = vpop.permute.xlu1 %637 }
0x160a   :  { %904 = vrot.lane.b32.xlu0 %v903_v8, %s1679_s8 }
0x160d   :  { %v993_v7 = vpop.permute.xlu1 %992 }
0x1612   :  { %v1086_v41 = vpop.permute.xlu1 %1085 }
0x1616   :  { %v998_v55 = vpop.permute.xlu1 %997 }
0x1617   :  { %v1000_v57 = vmul.f32 %v998_v55, %v993_v7 }
0x161a   :  { %v456_v3 = vpop.permute.xlu1 %455 }
0x161b   :  { %v458_v12 = vmul.f32 %v456_v3, %v1847_v26  ;;  %v1685_v26 = vmov 1966171168  }
0x166b   :  { %v1077_v44 = vpop.permute.xlu0 %1076 }
0x166c   :  { %v1079_v46 = vmul.f32 %v1077_v44, %v1074_v42  ;;  %v1393_v42 = vld [vmem:[%s2046_s5] ss:$0 sm:$0xff] }
0x166e   :  { %v1083_v47 = vadd.f32 %v1082_v45, %v1079_v46 }
0x1670   :  { %v1089_v49 = vrot.slane %v1083_v47, 6 }
0x1672   :  { %1090 = vrot.lane.b32.xlu0 %v1089_v49, %s1679_s8 }
0x1676   :  { %815 = vperm.xlu0 %1614, %v365_v59   ;;  %v1180_v59 = vunpack.c.l.s4 %v1685_v26 }
0x1678   :  { %v1181_v33 = vunpack.c.0.s8 %v1180_v59 }
0x167a   :  { %1615 = vset.pattern.permute.xlu0 %v1681_v34  ;;  %v550_v6 = vpop.permute.xlu1 %549  ;;  %v1184_v32 = vsub.s32 %v1181_v33, %v1183_v30 }
0x167b   :  { %v552_v14 = vadd.f32 %v550_v6, %v458_v12 }
0x167c   :  { %v633_v50 = vpop.permute.xlu0 %632 }
0x167d   :  { %v640_v51 = vmul.f32 %v638_v48, %v633_v50 }
0x167f   :  { %642 = vrot.lane.b32.xlu1 %v640_v51, %s1684_s2 }
0x1681   :  { %v900_v4 = vpop.permute.xlu0 %899 }
0x1685   :  { %v731_v53 = vpop.permute.xlu0 %730 }
0x1686   :  { %v733_v54 = vmul.f32 %v731_v53, %v726_v38 }
0x1688   :  { %735 = vrot.lane.b32.xlu0 %v733_v54, %s1684_s2 }
0x1689   :  { %v905_v56 = vpop.permute.xlu0 %904 }
0x168a   :  { %v907_v58 = vmul.f32 %v905_v56, %v900_v4 }
0x168c   :  { %909 = vrot.lane.b32.xlu1 %v907_v58, %s1684_s2  ;;  %1002 = vrot.lane.b32.xlu0 %v1000_v57, %s1684_s2 }
0x16e4   :  { %v1091_v63 = vpop.permute.xlu0 %1090 }
0x16e5   :  { %v1093_v0 = vmul.f32 %v1091_v63, %v1086_v41 }
0x16e7   :  { %1095 = vrot.lane.b32.xlu1 %v1093_v0, %s1684_s2 }
0x16f1   :  { %v643_v13 = vpop.permute.xlu1 %642 }
0x16f2   :  { %v645_v17 = vadd.f32 %v643_v13, %v552_v14 }
0x16f5   :  { %v816_v11 = vpop.permute.xlu0 %815 }
0x16f6   :  { %v818_v19 = vmul.f32 %v816_v11, %v1925_v15  ;;  %v1397_v15 = vld.sshfl [vmem:[%s2045_s1] sm:$0x11 pattern:$0x75316420] }
0x16f7   :  { %v1185_v34 = vrot.slane %v1397_v15, %v1184_v32  ;;  %v1178_v38 = vcombine.high %v1397_v15, %v1397_v15 }
0x16f9   :  { %v1200_v52 = vrot.slane %v1185_v34, %v1199_v35  ;;  %v1192_v39 = vrot.slane %v1178_v38, %v1184_v32 }
0x16fa   :  { %v736_v16 = vpop.permute.xlu0 %735 }
0x16fb   :  { %v738_v18 = vadd.f32 %v736_v16, %v645_v17  ;;  %vm1205_vm12 = vcmp.eq.s32.totalorder %v1200_v52, %v1183_v30  ;;  %vm1206_vm13 = vcmp.eq.s32.totalorder %v1200_v52, %v1195_v9  ;;  %vm1207_vm15 = vcmp.eq.s32.totalorder %v1200_v52, %v1196_v36 }
0x16fc   :  { %vm1404_vm14 = vmpackc.low %vm1206_vm13, %vm1205_vm12  ;;  %v1400_v37 = vsel %vm1207_vm15, 1.0, %v1674_v5  ;;  %v1204_v1 = vrot.slane %v1192_v39, %v1199_v35 }
0x16fd   :  { %v819_v21 = vadd.f32 %v818_v19, %v738_v18  ;;  %1571 = vmatpush3.bf16.msk.msra.mxu0 %vm1404_vm14, %v1686_v20  ;;  %v1224_v10 = vpack.c.bf16 %v1400_v37, %v1400_v37 }
0x16fe   :  { %v910_v22 = vpop.permute.xlu1 %909  ;;  %v1003_v24 = vpop.permute.xlu0 %1002  ;;  %1572 = vmatprep.subr.bf16.mxu0 %v1674_v5  ;;  %vm1208_vm2 = vcmp.eq.s32.totalorder %v1204_v1, %v1183_v30  ;;  %vm1209_vm3 = vcmp.eq.s32.totalorder %v1204_v1, %v1195_v9  ;;  %vm1210_vm5 = vcmp.eq.s32.totalorder %v1204_v1, %v1196_v36 }
0x16ff   :  { %v912_v23 = vadd.f32 %v910_v22, %v819_v21  ;;  %v1258_v40 = vsel %vm69_vm0, %v1224_v10, 0  ;;  %vm2018_vm4 = vmpackc.low %vm1209_vm3, %vm1208_vm2  ;;  %v1403_v48 = vsel %vm1210_vm5, 1.0, %v1674_v5 }
0x1700   :  { %v1226_v41 = vpack.c.bf16 %v1403_v48, %v1403_v48 }
0x1701   :  { %v1005_v31 = vadd.f32 %v1003_v24, %v912_v23  ;;  %1573 = vmatpush3.bf16.msra.mxu0 %v1258_v40 }
0x1702   :  { %1578 = vmatprep.subr.bf16.mxu0 %v1674_v5  ;;  %v1304_v53 = vsel %vm69_vm0, %v1226_v41, 0 }
0x1759   :  { %v1096_v25 = vpop.permute.xlu1 %1095 }
0x175a   :  { %v1098_v27 = vadd.f32 %v1096_v25, %v1005_v31 }
0x175c   :  { %v1099_v28 = vpack.c.bf16 %v1098_v27, %v1098_v27 }
0x175e   :  { %1111 = vrot.lane.b32.xlu0 %v1099_v28, %s1679_s8 }
0x17d0   :  { %v1112_v29 = vpop.permute.xlu0 %1111 }
0x17d1   :  { %1567 = vmatmul.mubr.msk.bf16.vlgmr.msra.gmra.mrb[24].mxu1 %vm315_vm11, %v1112_v29 }
0x18a4   :  { %v1164_v43 = vpop.f32.mrb[24].mxu1 }
0x18a5   :  { %v1165_v44 = vadd.f32 %v1393_v42, %v1164_v43  ;;  %v1568_v45 = vpop.f32.mrb[25].mxu1 }
0x18a6   :  { %v1167_v46 = vpop.f32.mrb[26].mxu1 }
0x18a7   :  { %v1234_v47 = vrot.slane %v1165_v44, %v1184_v32  ;;  %v1569_v49 = vpop.f32.mrb[27].mxu1 }
0x18a9   :  { %v1242_v7 = vrot.slane %v1234_v47, %v1184_v32  ;;  %v1235_v50 = vcombine.high %v1234_v47, %v1234_v47 }
0x18ab   :  { %v1252_v51 = vpack.c.bf16 %v1242_v7, %v1242_v7  ;;  %v1249_v4 = vrot.slane %v1235_v50, %v1184_v32 }
0x18ad   :  { %1575 = vmatmul.mubr.msk.bf16.vlgmr.msra.gmra.mrb[28].mxu0 %vm65_vm6, %v1252_v51  ;;  %v1253_v54 = vpack.c.bf16 %v1249_v4, %v1249_v4 }
0x18ae   :  { %1579 = vmatpush3.bf16.msk.msra.mxu0 %vm2018_vm4, %v1686_v20  ;;  %1582 = vmatprep.mubr.msk.bf16.mxu0 %vm1675_vm1, %v1674_v5 }
0x18af   :  { %1580 = vmatprep.subr.bf16.mxu0 %v1674_v5 }
0x18b2   :  { %1581 = vmatpush3.bf16.msra.mxu0 %v1304_v53 }
0x18b5   :  { %1583 = vmatmul.mubr.msk.bf16.vlgmr.msra.gmra.mrb[32].mxu0 %vm65_vm6, %v1253_v54 }
0x1980   :  { %v1294_v55 = vpop.f32.mrb[28].mxu0 }
0x1981   :  { %v1576_v56 = vpop.f32.mrb[29].mxu0 }
0x1982   :  { %v1297_v57 = vpop.f32.mrb[30].mxu0 }
0x1983   :  { %v1577_v58 = vpop.f32.mrb[31].mxu0 }
0x1988   :  { %v1340_v60 = vpop.f32.mrb[32].mxu0 }
0x1989   :  { %v1348_v61 = vrot.slane %v1340_v60, 7  ;;  %v1584_v62 = vpop.f32.mrb[33].mxu0 }
0x198a   :  { %v1343_v63 = vpop.f32.mrb[34].mxu0 }
0x198b   :  { %v1350_v0 = vsel %vm1349_vm7, %v1348_v61, %v1294_v55  ;;  %v1585_v2 = vpop.f32.mrb[35].mxu0 }
0x198c   :  { %1352 = vst [vmem:[%s2047_s10] sm:$0x3] %v1350_v0 }

</bundles_post_ra>
